<compile_context>
chip_gen: v6e
topology: v6e:2x2x1
jax: 0.10.0
libtpu: 0.0.40
codegen_flags: <defaults>
</compile_context>

<pallas_src>
import jax
import jax.numpy as jnp
from jax.experimental import pallas as pl
from jax.experimental.pallas import tpu as pltpu


def _round_up(x, m):
    return ((x + m - 1) // m) * m


def _autoencoder_kernel(x_ref, w1_ref, b1_ref, w2_ref, b2_ref, out_ref):
    # Encoder: Linear(in -> hid) + ReLU.  bf16 matmul operands, f32 accumulate.
    x = x_ref[...].astype(jnp.bfloat16)          # in-kernel cast (VPU slack)
    h = jnp.dot(x, w1_ref[...], preferred_element_type=jnp.float32)
    h = jnp.maximum(h + b1_ref[...], 0.0)
    # Decoder: Linear(hid -> in) + ReLU.  Hidden activation never touches HBM.
    y = jnp.dot(h.astype(jnp.bfloat16), w2_ref[...],
                preferred_element_type=jnp.float32)
    y = jnp.maximum(y + b2_ref[...], 0.0)
    out_ref[...] = y.astype(out_ref.dtype)


def prepare_params(w1, b1, w2, b2):
    """One-time parameter prep (do NOT redo per forward call).

    w1: (in_dim, hid)  -- transpose of torch's encoder weight
    w2: (hid, in_dim)  -- transpose of torch's decoder weight
    Weights cast to bf16 (MXU operands); biases kept f32 as (1, n) rows.
    """
    in_dim, hid = w1.shape
    assert w2.shape == (hid, in_dim)
    return (w1.astype(jnp.bfloat16),
            jnp.asarray(b1, jnp.float32).reshape(1, hid),
            w2.astype(jnp.bfloat16),
            jnp.asarray(b2, jnp.float32).reshape(1, in_dim))


def autoencoder_forward(x, w1_bf16, b1, w2_bf16, b2, *, batch_tile=1024):
    """x: (B, in_dim) f32.  Params from prepare_params().

    Returns (B, in_dim) f32 = ReLU(ReLU(x@w1+b1)@w2+b2).
    """
    B, in_dim = x.shape
    hid = w1_bf16.shape[1]
    assert w1_bf16.shape == (in_dim, hid) and w2_bf16.shape == (hid, in_dim)
    assert b1.shape == (1, hid) and b2.shape == (1, in_dim)

    # Adaptive tile: never pad a small batch up to a huge tile.
    batch_tile = min(batch_tile, _round_up(B, 8))
    batch_tile = max(8, _round_up(batch_tile, 8))
    B_pad = _round_up(B, batch_tile)

    x_in = x if B_pad == B else jnp.pad(x, ((0, B_pad - B), (0, 0)))

    grid = (B_pad // batch_tile,)

    flops = 4 * B_pad * in_dim * hid                       # two matmuls
    bytes_accessed = (B_pad * in_dim * 4                   # x  (f32 read)
                      + B_pad * in_dim * 4                 # out (f32 write)
                      + in_dim * hid * 2 + hid * in_dim * 2  # weights (bf16)
                      + hid * 4 + in_dim * 4)              # biases (f32)

    out = pl.pallas_call(
        _autoencoder_kernel,
        out_shape=jax.ShapeDtypeStruct((B_pad, in_dim), jnp.float32),
        grid_spec=pltpu.PrefetchScalarGridSpec(
            num_scalar_prefetch=0,
            grid=grid,
            in_specs=[
                # activations: tile over batch; last dim = full extent (160)
                pl.BlockSpec((batch_tile, in_dim), lambda i: (i, 0)),
                # weights / biases: resident (constant index_map -> DMA'd once)
                pl.BlockSpec((in_dim, hid), lambda i: (0, 0)),
                pl.BlockSpec((1, hid), lambda i: (0, 0)),
                pl.BlockSpec((hid, in_dim), lambda i: (0, 0)),
                pl.BlockSpec((1, in_dim), lambda i: (0, 0)),
            ],
            out_specs=pl.BlockSpec((batch_tile, in_dim), lambda i: (i, 0)),
        ),
        compiler_params=pltpu.CompilerParams(
            dimension_semantics=("parallel",),
        ),
        cost_estimate=pl.CostEstimate(
            flops=flops, transcendentals=0, bytes_accessed=bytes_accessed),
    )(x_in, w1_bf16, b1, w2_bf16, b2)

    return out if B_pad == B else out[:B]


def init_params(key, input_dim=160, hidden_dim1=128, dtype=jnp.float32):
    """Deterministic PyTorch-style (uniform +-1/sqrt(fan_in)) initialization.

    Weights are stored as (in_features, out_features) == transpose of torch's
    weight, so the kernel does x @ W directly.
    """
    k1, k2, k3, k4 = jax.random.split(key, 4)
    bound1 = 1.0 / jnp.sqrt(jnp.float32(input_dim))
    bound2 = 1.0 / jnp.sqrt(jnp.float32(hidden_dim1))
    w1 = jax.random.uniform(k1, (input_dim, hidden_dim1), dtype, -bound1, bound1)
    b1 = jax.random.uniform(k2, (1, hidden_dim1), dtype, -bound1, bound1)
    w2 = jax.random.uniform(k3, (hidden_dim1, input_dim), dtype, -bound2, bound2)
    b2 = jax.random.uniform(k4, (1, input_dim), dtype, -bound2, bound2)
    return w1, b1, w2, b2


def reference_forward_f32(x, w1, b1, w2, b2):
    h = jnp.maximum(x @ w1 + b1, 0.0)
    return jnp.maximum(h @ w2 + b2, 0.0)


def reference_forward_bf16(x, w1, b1, w2, b2):
    """Same precision recipe as the kernel: bf16 matmul operands, f32 accum."""
    xb = x.astype(jnp.bfloat16)
    h = jnp.dot(xb, w1.astype(jnp.bfloat16),
                preferred_element_type=jnp.float32) + b1
    h = jnp.maximum(h, 0.0)
    y = jnp.dot(h.astype(jnp.bfloat16), w2.astype(jnp.bfloat16),
                preferred_element_type=jnp.float32) + b2
    return jnp.maximum(y, 0.0)


if __name__ == "__main__":
    input_dim, hidden_dim1 = 160, 128
    batch = 512
    key = jax.random.PRNGKey(0)
    kx, kp = jax.random.split(key)
    x = jax.random.normal(kx, (batch, input_dim), jnp.float32)
    w1, b1, w2, b2 = init_params(kp, input_dim, hidden_dim1)
    params = prepare_params(w1, b1, w2, b2)          # one-time prep

    ref_bf16 = reference_forward_bf16(x, w1, b1, w2, b2)
    ref_f32 = reference_forward_f32(x, w1, b1, w2, b2)

    # Single-tile path (adaptive batch_tile caps 1024 -> 512, grid = 1).
    out1 = jax.block_until_ready(autoencoder_forward(x, *params))
    assert out1.shape == (batch, input_dim)
    assert jnp.allclose(out1, ref_bf16, atol=1e-3, rtol=1e-3)
    assert jnp.allclose(out1, ref_f32, atol=3e-2, rtol=3e-2)

    # Multi-step grid path (grid = 4) to exercise the pipelined / parallel axis.
    out2 = jax.block_until_ready(
        autoencoder_forward(x, *params, batch_tile=128))
    assert out2.shape == (batch, input_dim)
    assert jnp.allclose(out2, ref_bf16, atol=1e-3, rtol=1e-3)
    assert jnp.allclose(out2, out1, atol=1e-5, rtol=1e-5)

    print("KERNEL_OK")
</pallas_src>

<mosaic_0001>
module attributes {stable_mosaic.version = 11 : i64} {
  func.func @_autoencoder_kernel(%arg0: i32, %arg1: memref<512x160xf32, #tpu.memory_space<vmem>>, %arg2: memref<160x128xbf16, #tpu.memory_space<vmem>>, %arg3: memref<1x128xf32, #tpu.memory_space<vmem>>, %arg4: memref<128x160xbf16, #tpu.memory_space<vmem>>, %arg5: memref<1x160xf32, #tpu.memory_space<vmem>>, %arg6: memref<512x160xf32, #tpu.memory_space<vmem>>) attributes {dimension_semantics = [#tpu.dimension_semantics<parallel>], iteration_bounds = array<i64: 1>, scalar_prefetch = 0 : i64, scratch_operands = 0 : i64, tpu.core_type = #tpu.core_type<tc>, window_params = [{transform_indices = @transform_0, window_bounds = array<i64: 512, 160>}, {pipeline_mode = #tpu.pipeline_mode<synchronous>, transform_indices = @transform_1, window_bounds = array<i64: 160, 128>}, {pipeline_mode = #tpu.pipeline_mode<synchronous>, transform_indices = @transform_2, window_bounds = array<i64: 1, 128>}, {pipeline_mode = #tpu.pipeline_mode<synchronous>, transform_indices = @transform_3, window_bounds = array<i64: 128, 160>}, {pipeline_mode = #tpu.pipeline_mode<synchronous>, transform_indices = @transform_4, window_bounds = array<i64: 1, 160>}, {transform_indices = @transform_5, window_bounds = array<i64: 512, 160>}]} {
    %c0 = arith.constant 0 : index
    %c0_0 = arith.constant 0 : index
    %0 = vector.load %arg1[%c0, %c0_0] : memref<512x160xf32, #tpu.memory_space<vmem>>, vector<512x160xf32>
    %1 = arith.truncf %0 : vector<512x160xf32> to vector<512x160xbf16>
    %c0_1 = arith.constant 0 : index
    %c0_2 = arith.constant 0 : index
    %2 = vector.load %arg2[%c0_1, %c0_2] : memref<160x128xbf16, #tpu.memory_space<vmem>>, vector<160x128xbf16>
    %cst = arith.constant dense<0.000000e+00> : vector<512x128xf32>
    %3 = tpu.matmul %1, %2, %cst {dimension_numbers = #tpu.dot_dimension_numbers<[1], [0], [0], [1], [0, 0, 1, 1], [], []>} : vector<512x160xbf16>, vector<160x128xbf16>, vector<512x128xf32> -> vector<512x128xf32>
    %c0_3 = arith.constant 0 : index
    %c0_4 = arith.constant 0 : index
    %4 = vector.load %arg3[%c0_3, %c0_4] : memref<1x128xf32, #tpu.memory_space<vmem>>, vector<1x128xf32>
    %5 = vector.broadcast %4 : vector<1x128xf32> to vector<512x128xf32>
    %6 = arith.addf %3, %5 : vector<512x128xf32>
    %cst_5 = arith.constant 0.000000e+00 : f32
    %7 = vector.broadcast %cst_5 : f32 to vector<512x128xf32>
    %8 = arith.maximumf %6, %7 : vector<512x128xf32>
    %9 = arith.truncf %8 : vector<512x128xf32> to vector<512x128xbf16>
    %c0_6 = arith.constant 0 : index
    %c0_7 = arith.constant 0 : index
    %10 = vector.load %arg4[%c0_6, %c0_7] : memref<128x160xbf16, #tpu.memory_space<vmem>>, vector<128x160xbf16>
    %cst_8 = arith.constant dense<0.000000e+00> : vector<512x160xf32>
    %11 = tpu.matmul %9, %10, %cst_8 {dimension_numbers = #tpu.dot_dimension_numbers<[1], [0], [0], [1], [0, 0, 1, 1], [], []>} : vector<512x128xbf16>, vector<128x160xbf16>, vector<512x160xf32> -> vector<512x160xf32>
    %c0_9 = arith.constant 0 : index
    %c0_10 = arith.constant 0 : index
    %12 = vector.load %arg5[%c0_9, %c0_10] : memref<1x160xf32, #tpu.memory_space<vmem>>, vector<1x160xf32>
    %13 = vector.broadcast %12 : vector<1x160xf32> to vector<512x160xf32>
    %14 = arith.addf %11, %13 : vector<512x160xf32>
    %cst_11 = arith.constant 0.000000e+00 : f32
    %15 = vector.broadcast %cst_11 : f32 to vector<512x160xf32>
    %16 = arith.maximumf %14, %15 : vector<512x160xf32>
    %c0_12 = arith.constant 0 : index
    %c0_13 = arith.constant 0 : index
    %17 = vector.load %arg6[%c0_12, %c0_13] : memref<512x160xf32, #tpu.memory_space<vmem>>, vector<512x160xf32>
    tpu.vector_store %arg6[%c0_12, %c0_13], %16 {strides = array<i32>} : memref<512x160xf32, #tpu.memory_space<vmem>>, vector<512x160xf32>,
    return
  }
  func.func @transform_0(%arg0: i32) -> (i32, i32) {
    %c0_i32 = arith.constant 0 : i32
    %c0_i32_0 = arith.constant 0 : i32
    return %arg0, %c0_i32 : i32, i32
  }
  func.func @transform_1(%arg0: i32) -> (i32, i32) {
    %c0_i32 = arith.constant 0 : i32
    %c0_i32_0 = arith.constant 0 : i32
    %c0_i32_1 = arith.constant 0 : i32
    return %c0_i32, %c0_i32_0 : i32, i32
  }
  func.func @transform_2(%arg0: i32) -> (i32, i32) {
    %c0_i32 = arith.constant 0 : i32
    %c0_i32_0 = arith.constant 0 : i32
    %c0_i32_1 = arith.constant 0 : i32
    return %c0_i32, %c0_i32_0 : i32, i32
  }
  func.func @transform_3(%arg0: i32) -> (i32, i32) {
    %c0_i32 = arith.constant 0 : i32
    %c0_i32_0 = arith.constant 0 : i32
    %c0_i32_1 = arith.constant 0 : i32
    return %c0_i32, %c0_i32_0 : i32, i32
  }
  func.func @transform_4(%arg0: i32) -> (i32, i32) {
    %c0_i32 = arith.constant 0 : i32
    %c0_i32_0 = arith.constant 0 : i32
    %c0_i32_1 = arith.constant 0 : i32
    return %c0_i32, %c0_i32_0 : i32, i32
  }
  func.func @transform_5(%arg0: i32) -> (i32, i32) {
    %c0_i32 = arith.constant 0 : i32
    %c0_i32_0 = arith.constant 0 : i32
    return %arg0, %c0_i32 : i32, i32
  }
}

</mosaic_0001>

<bundles_post_ra>
// kernel: tpu_custom_call.1
= control target key start
LH: loop header
LB: loop body
LE: loop exit
PB: predicated region body
PF: predicated region fallthrough
CT: control target
= control target key end

     0   :  { %v1597_v0 = vmov 0   ;;  %vm300_vm0 = vcmask 261120   ;;  %s2816_s1 = inlined_call_operand.vmem [shape: bf16[160,128], index: 1, kind: input, shape index: {}]   ;;  %s2817_s0 = inlined_call_operand.vmem [shape: f32[512,160], index: 0, kind: input, shape index: {}]   ;;  %s2818_s3 = inlined_call_operand.vmem [shape: bf16[128,160], index: 3, kind: input, shape index: {}]   ;;  %s2819_s2 = inlined_call_operand.vmem [shape: f32[1,128], index: 2, kind: input, shape index: {}]   ;;  %s2820_s4 = inlined_call_operand.vmem [shape: f32[1,160], index: 4, kind: input, shape index: {}]   ;;  %s2821_s5 = inlined_call_operand.vmem [shape: f32[512,160], index: 5, kind: output, shape index: {}]  }
   0x1   :  { %397 = vmatprep.subr.bf16.mxu0 %v1597_v0  ;;  %v1563_v1 = vld [vmem:[%s2816_s1 + $0x38] sm:$0xff]   ;;  %922 = vmatprep.mubr.bf16.mxu1 %v1597_v0  ;;  %v1564_v2 = vld [vmem:[%s2816_s1 + $0x30] sm:$0xff]   ;;  %v1565_v3 = vld [vmem:[%s2816_s1 + $0x28] sm:$0xff]  }
   0x2   :  { %398 = vmatpush1.bf16.msra.mxu0 %v1563_v1  ;;  %v1566_v4 = vld [vmem:[%s2816_s1 + $0x20] sm:$0xff]   ;;  %v22_v5 = vld [vmem:[%s2817_s0 + $0x8] sm:$0xff]  ;;  %v24_v6 = vld [vmem:[%s2817_s0 + $0x18] sm:$0xff] }
   0x3   :  { %399 = vmatprep.subr.bf16.mxu0 %v1597_v0  ;;  %v150_v7 = vpack.c.bf16 %v24_v6, %v22_v5  ;;  %v1567_v8 = vld [vmem:[%s2816_s1 + $0x18] sm:$0xff]   ;;  %v1568_v9 = vld [vmem:[%s2816_s1 + $0x10] sm:$0xff]   ;;  %v1569_v10 = vld [vmem:[%s2816_s1 + $0x8] sm:$0xff]  }
   0x4   :  { %v1570_v11 = vld [vmem:[%s2816_s1] sm:$0xff]   ;;  %v1571_v12 = vld [vmem:[%s2816_s1 + $0x48] sm:$0xff]   ;;  %v23_v15 = vld [vmem:[%s2817_s0 + $0x10] sm:$0xff] }
   0x5   :  { %1514 = vmatprep.mubr.msk.bf16.mxu0 %vm300_vm0, %v150_v7  ;;  %v1572_v13 = vld [vmem:[%s2816_s1 + $0x40] sm:$0xff]   ;;  %v26_v16 = vld [vmem:[%s2817_s0 + $0x28] sm:$0xff]  ;;  %v28_v17 = vld [vmem:[%s2817_s0 + $0x38] sm:$0xff] }
   0x6   :  { %400 = vmatpush1.bf16.msra.mxu0 %v1564_v2  ;;  %v21_v14 = vld [vmem:[%s2817_s0] sm:$0xff]  ;;  %v152_v19 = vpack.c.bf16 %v28_v17, %v26_v16  ;;  %v27_v21 = vld [vmem:[%s2817_s0 + $0x30] sm:$0xff]  ;;  %v30_v22 = vld [vmem:[%s2817_s0 + $0x48] sm:$0xff] }
   0x7   :  { %401 = vmatprep.subr.bf16.mxu0 %v1597_v0  ;;  %v149_v18 = vpack.c.bf16 %v23_v15, %v21_v14  ;;  %v25_v20 = vld [vmem:[%s2817_s0 + $0x20] sm:$0xff]  ;;  %v32_v23 = vld [vmem:[%s2817_s0 + $0x58] sm:$0xff]  ;;  %v31_v27 = vld [vmem:[%s2817_s0 + $0x50] sm:$0xff] }
   0x8   :  { %v151_v24 = vpack.c.bf16 %v27_v21, %v25_v20  ;;  %v154_v25 = vpack.c.bf16 %v32_v23, %v30_v22  ;;  %v29_v26 = vld [vmem:[%s2817_s0 + $0x40] sm:$0xff]  ;;  %v34_v28 = vld [vmem:[%s2817_s0 + $0x68] sm:$0xff]  ;;  %v36_v29 = vld [vmem:[%s2817_s0 + $0x78] sm:$0xff] }
   0x9   :  { %v153_v30 = vpack.c.bf16 %v31_v27, %v29_v26  ;;  %v156_v31 = vpack.c.bf16 %v36_v29, %v34_v28  ;;  %v33_v32 = vld [vmem:[%s2817_s0 + $0x60] sm:$0xff]  ;;  %v35_v33 = vld [vmem:[%s2817_s0 + $0x70] sm:$0xff]  ;;  %v38_v34 = vld [vmem:[%s2817_s0 + $0x88] sm:$0xff] }
   0xa   :  { %402 = vmatpush1.bf16.msra.mxu0 %v1565_v3  ;;  %v40_v35 = vld [vmem:[%s2817_s0 + $0x98] sm:$0xff]  ;;  %v155_v36 = vpack.c.bf16 %v35_v33, %v33_v32  ;;  %v37_v38 = vld [vmem:[%s2817_s0 + $0x80] sm:$0xff]  ;;  %v39_v39 = vld [vmem:[%s2817_s0 + $0x90] sm:$0xff] }
   0xb   :  { %403 = vmatprep.subr.bf16.mxu0 %v1597_v0  ;;  %v158_v37 = vpack.c.bf16 %v40_v35, %v38_v34  ;;  %v42_v40 = vld [vmem:[%s2817_s0 + $0xa8] sm:$0xff]  ;;  %v44_v41 = vld [vmem:[%s2817_s0 + $0xb8] sm:$0xff]  ;;  %v157_v42 = vpack.c.bf16 %v39_v39, %v37_v38  ;;  %v41_v44 = vld [vmem:[%s2817_s0 + $0xa0] sm:$0xff] }
   0xc   :  { %v160_v43 = vpack.c.bf16 %v44_v41, %v42_v40  ;;  %v43_v45 = vld [vmem:[%s2817_s0 + $0xb0] sm:$0xff]  ;;  %v46_v46 = vld [vmem:[%s2817_s0 + $0xc8] sm:$0xff]  ;;  %v48_v47 = vld [vmem:[%s2817_s0 + $0xd8] sm:$0xff] }
   0xd   :  { %v159_v48 = vpack.c.bf16 %v43_v45, %v41_v44  ;;  %v162_v49 = vpack.c.bf16 %v48_v47, %v46_v46  ;;  %v45_v50 = vld [vmem:[%s2817_s0 + $0xc0] sm:$0xff]  ;;  %v47_v51 = vld [vmem:[%s2817_s0 + $0xd0] sm:$0xff]  ;;  %v50_v52 = vld [vmem:[%s2817_s0 + $0xe8] sm:$0xff] }
   0xe   :  { %404 = vmatpush1.bf16.msra.mxu0 %v1566_v4  ;;  %v52_v53 = vld [vmem:[%s2817_s0 + $0xf8] sm:$0xff]  ;;  %v1576_v56 = vld [vmem:[%s2818_s3 + $0x64] ss:$8 sps:$4 sm:$0xff]   ;;  %v161_v57 = vpack.c.bf16 %v47_v51, %v45_v50  ;;  %v1578_v59 = vld [vmem:[%s2818_s3 + $0x60] ss:$8 sps:$4 sm:$0xff]  }
   0xf   :  { %405 = vmatprep.subr.bf16.mxu0 %v1597_v0  ;;  %v1573_v54 = vld [vmem:[%s2818_s3 + $0x74] ss:$8 sps:$4 sm:$0xff]   ;;  %v1575_v55 = vld [vmem:[%s2818_s3 + $0x70] ss:$8 sps:$4 sm:$0xff]   ;;  %v164_v58 = vpack.c.bf16 %v52_v53, %v50_v52  ;;  %v49_v62 = vld [vmem:[%s2817_s0 + $0xe0] sm:$0xff] }
  0x10   :  { %890 = vmatprep.subr.bf16.mxu1 %v1573_v54  ;;  %v1579_v60 = vld [vmem:[%s2818_s3 + $0x54] ss:$8 sps:$4 sm:$0xff]   ;;  %v1581_v61 = vld [vmem:[%s2818_s3 + $0x50] ss:$8 sps:$4 sm:$0xff]   ;;  %v1582_v1 = vld [vmem:[%s2818_s3 + $0x44] ss:$8 sps:$4 sm:$0xff]  }
  0x11   :  { %891 = vmatpush1.bf16.msra.mxu1 %v1575_v55  ;;  %v51_v63 = vld [vmem:[%s2817_s0 + $0xf0] sm:$0xff]  ;;  %v54_v2 = vld [vmem:[%s2817_s0 + $0x108] sm:$0xff]  ;;  %v56_v3 = vld [vmem:[%s2817_s0 + $0x118] sm:$0xff] }
  0x12   :  { %406 = vmatpush1.bf16.msra.mxu0 %v1567_v8  ;;  %892 = vmatprep.subr.bf16.mxu1 %v1576_v56  ;;  %v163_v4 = vpack.c.bf16 %v51_v63, %v49_v62  ;;  %v166_v5 = vpack.c.bf16 %v56_v3, %v54_v2  ;;  %v1584_v6 = vld [vmem:[%s2818_s3 + $0x40] ss:$8 sps:$4 sm:$0xff]   ;;  %v1585_v7 = vld [vmem:[%s2818_s3 + $0x34] ss:$8 sps:$4 sm:$0xff]   ;;  %v1587_v8 = vld [vmem:[%s2818_s3 + $0x30] ss:$8 sps:$4 sm:$0xff]  }
  0x13   :  { %407 = vmatprep.subr.bf16.mxu0 %v1597_v0  ;;  %v1590_v16 = vld [vmem:[%s2818_s3 + $0x20] ss:$8 sps:$4 sm:$0xff]   ;;  %v64_v21 = vld [vmem:[%s2817_s0 + $0x158] sm:$0xff]  ;;  %v63_v28 = vld [vmem:[%s2817_s0 + $0x150] sm:$0xff] }
  0x14   :  { %v57_v17 = vld [vmem:[%s2817_s0 + $0x120] sm:$0xff]  ;;  %v62_v20 = vld [vmem:[%s2817_s0 + $0x148] sm:$0xff]  ;;  %v1593_v22 = vld [vmem:[%s2818_s3 + $0x10] ss:$8 sps:$4 sm:$0xff]  }
  0x15   :  { %893 = vmatpush1.bf16.msra.mxu1 %v1578_v59  ;;  %v1596_v26 = vld [vmem:[%s2818_s3] ss:$8 sps:$4 sm:$0xff]   ;;  %v67_v34 = vld [vmem:[%s2817_s0 + $0x170] sm:$0xff]  ;;  %v84_v54 = vld [vmem:[%s2817_s0 + $0x1f8] sm:$0xff] }
  0x16   :  { %408 = vmatpush1.bf16.msra.mxu0 %v1568_v9  ;;  %894 = vmatprep.subr.bf16.mxu1 %v1579_v60  ;;  %v53_v9 = vld [vmem:[%s2817_s0 + $0x100] sm:$0xff]  ;;  %v66_v29 = vld [vmem:[%s2817_s0 + $0x168] sm:$0xff]  ;;  %v71_v40 = vld [vmem:[%s2817_s0 + $0x190] sm:$0xff] }
  0x17   :  { %409 = vmatprep.subr.bf16.mxu0 %v1597_v0  ;;  %v61_v27 = vld [vmem:[%s2817_s0 + $0x140] sm:$0xff]  ;;  %v70_v35 = vld [vmem:[%s2817_s0 + $0x188] sm:$0xff]  ;;  %v75_v46 = vld [vmem:[%s2817_s0 + $0x1b0] sm:$0xff] }
  0x18   :  { %v65_v33 = vld [vmem:[%s2817_s0 + $0x160] sm:$0xff]  ;;  %v74_v41 = vld [vmem:[%s2817_s0 + $0x1a8] sm:$0xff]  ;;  %v79_v52 = vld [vmem:[%s2817_s0 + $0x1d0] sm:$0xff] }
  0x19   :  { %895 = vmatpush1.bf16.msra.mxu1 %v1581_v61  ;;  %v69_v39 = vld [vmem:[%s2817_s0 + $0x180] sm:$0xff]  ;;  %v78_v47 = vld [vmem:[%s2817_s0 + $0x1c8] sm:$0xff]  ;;  %v88_v60 = vld [vmem:[%s2817_s0 + $0x218] sm:$0xff] }
  0x1a   :  { %410 = vmatpush1.bf16.msra.mxu0 %v1569_v10  ;;  %896 = vmatprep.subr.bf16.mxu1 %v1582_v1  ;;  %v55_v10 = vld [vmem:[%s2817_s0 + $0x110] sm:$0xff]  ;;  %v73_v45 = vld [vmem:[%s2817_s0 + $0x1a0] sm:$0xff]  ;;  %v82_v53 = vld [vmem:[%s2817_s0 + $0x1e8] sm:$0xff] }
  0x1b   :  { %411 = vmatprep.subr.bf16.mxu0 %v1597_v0  ;;  %v165_v14 = vpack.c.bf16 %v55_v10, %v53_v9  ;;  %v77_v51 = vld [vmem:[%s2817_s0 + $0x1c0] sm:$0xff]  ;;  %v180_v56 = vpack.c.bf16 %v84_v54, %v82_v53  ;;  %v86_v59 = vld [vmem:[%s2817_s0 + $0x208] sm:$0xff]  ;;  %v87_v1 = vld [vmem:[%s2817_s0 + $0x210] sm:$0xff] }
  0x1c   :  { %v177_v55 = vpack.c.bf16 %v79_v52, %v77_v51  ;;  %v182_v62 = vpack.c.bf16 %v88_v60, %v86_v59  ;;  %v85_v63 = vld [vmem:[%s2817_s0 + $0x200] sm:$0xff]  ;;  %v90_v2 = vld [vmem:[%s2817_s0 + $0x228] sm:$0xff]  ;;  %v92_v3 = vld [vmem:[%s2817_s0 + $0x238] sm:$0xff] }
  0x1d   :  { %897 = vmatpush1.bf16.msra.mxu1 %v1584_v6  ;;  %v89_v6 = vld [vmem:[%s2817_s0 + $0x220] sm:$0xff]  ;;  %v96_v9 = vld [vmem:[%s2817_s0 + $0x258] sm:$0xff]  ;;  %v126_v59 = vld [vmem:[%s2817_s0 + $0x348] sm:$0xff] }
  0x1e   :  { %412 = vmatpush1.bf16.msra.mxu0 %v1570_v11  ;;  %v1588_v11 = vld [vmem:[%s2818_s3 + $0x24] ss:$8 sps:$4 sm:$0xff]   ;;  %898 = vmatprep.subr.bf16.mxu1 %v1585_v7  ;;  %v91_v7 = vld [vmem:[%s2817_s0 + $0x230] sm:$0xff]  ;;  %v124_v51 = vld [vmem:[%s2817_s0 + $0x338] sm:$0xff] }
  0x1f   :  { %425 = vmatprep.subr.bf16.mxu0 %v1597_v0  ;;  %v183_v10 = vpack.c.bf16 %v91_v7, %v89_v6  ;;  %v2051_v54 = vld [vmem:[%s2819_s2] ss:$0 sm:$0xff]  ;;  %v128_v60 = vld [vmem:[%s2817_s0 + $0x358] sm:$0xff] }
  0x21   :  { %899 = vmatpush1.bf16.msra.mxu1 %v1587_v8  ;;  %v94_v8 = vld [vmem:[%s2817_s0 + $0x248] sm:$0xff] }
  0x22   :  { %426 = vmatpush2.bf16.msra.mxu0 %v1571_v12  ;;  %v58_v12 = vld [vmem:[%s2817_s0 + $0x128] sm:$0xff]  ;;  %900 = vmatprep.subr.bf16.mxu1 %v1588_v11  ;;  %v186_v11 = vpack.c.bf16 %v96_v9, %v94_v8  ;;  %v125_v8 = vld [vmem:[%s2817_s0 + $0x340] sm:$0xff]  ;;  %v127_v9 = vld [vmem:[%s2817_s0 + $0x350] sm:$0xff] }
  0x23   :  { %427 = vmatprep.subr.bf16.mxu0 %v1597_v0 }
  0x25   :  { %901 = vmatpush1.bf16.msra.mxu1 %v1590_v16 }
  0x26   :  { %428 = vmatpush2.bf16.msra.mxu0 %v1572_v13  ;;  %v60_v13 = vld [vmem:[%s2817_s0 + $0x138] sm:$0xff] }
  0x27   :  { %v168_v15 = vpack.c.bf16 %v60_v13, %v58_v12  ;;  %v93_v12 = vld [vmem:[%s2817_s0 + $0x240] sm:$0xff]  ;;  %v95_v13 = vld [vmem:[%s2817_s0 + $0x250] sm:$0xff] }
  0x28   :  { %v185_v16 = vpack.c.bf16 %v95_v13, %v93_v12  ;;  %v132_v12 = vld [vmem:[%s2817_s0 + $0x378] sm:$0xff] }
  0x29   :  { %430 = vmatmul.mubr.bf16.vlgmr.msra.gmra.mxu0 %v149_v18  ;;  %v59_v18 = vld [vmem:[%s2817_s0 + $0x130] sm:$0xff] }
  0x2a   :  { %1515 = vmatprep.mubr.msk.bf16.mxu0 %vm300_vm0, %v152_v19  ;;  %v1591_v19 = vld [vmem:[%s2818_s3 + $0x14] ss:$8 sps:$4 sm:$0xff]   ;;  %v167_v23 = vpack.c.bf16 %v59_v18, %v57_v17  ;;  %v97_v18 = vld [vmem:[%s2817_s0 + $0x260] sm:$0xff] }
  0x2b   :  { %902 = vmatprep.subr.bf16.mxu1 %v1591_v19  ;;  %v99_v19 = vld [vmem:[%s2817_s0 + $0x270] sm:$0xff] }
  0x2c   :  { %903 = vmatpush1.bf16.msra.mxu1 %v1593_v22  ;;  %v187_v22 = vpack.c.bf16 %v99_v19, %v97_v18 }
  0x31   :  { %438 = vmatmul.mubr.bf16.gmra.mxu0 %v151_v24  ;;  %v170_v24 = vpack.c.bf16 %v64_v21, %v62_v20  ;;  %v102_v20 = vld [vmem:[%s2817_s0 + $0x288] sm:$0xff]  ;;  %v104_v21 = vld [vmem:[%s2817_s0 + $0x298] sm:$0xff] }
  0x32   :  { %1516 = vmatprep.mubr.msk.bf16.mxu0 %vm300_vm0, %v154_v25  ;;  %v1594_v25 = vld [vmem:[%s2818_s3 + $0x4] ss:$8 sps:$4 sm:$0xff]  }
  0x33   :  { %904 = vmatprep.subr.bf16.mxu1 %v1594_v25  ;;  %v103_v25 = vld [vmem:[%s2817_s0 + $0x290] sm:$0xff] }
  0x34   :  { %905 = vmatpush1.bf16.msra.mxu1 %v1596_v26  ;;  %v106_v26 = vld [vmem:[%s2817_s0 + $0x2a8] sm:$0xff] }
  0x39   :  { %446 = vmatmul.mubr.bf16.gmra.mxu0 %v153_v30  ;;  %v68_v30 = vld [vmem:[%s2817_s0 + $0x178] sm:$0xff] }
  0x3a   :  { %1517 = vmatprep.mubr.msk.bf16.mxu0 %vm300_vm0, %v156_v31  ;;  %v169_v31 = vpack.c.bf16 %v63_v28, %v61_v27  ;;  %v172_v32 = vpack.c.bf16 %v68_v30, %v66_v29  ;;  %v108_v27 = vld [vmem:[%s2817_s0 + $0x2b8] sm:$0xff]  ;;  %v105_v30 = vld [vmem:[%s2817_s0 + $0x2a0] sm:$0xff] }
  0x3b   :  { %v192_v29 = vpack.c.bf16 %v108_v27, %v106_v26  ;;  %v134_v26 = vld [vmem:[%s2817_s0 + $0x388] sm:$0xff]  ;;  %v136_v27 = vld [vmem:[%s2817_s0 + $0x398] sm:$0xff] }
  0x41   :  { %454 = vmatmul.mubr.bf16.gmra.mxu0 %v155_v36  ;;  %v72_v36 = vld [vmem:[%s2817_s0 + $0x198] sm:$0xff] }
  0x42   :  { %1518 = vmatprep.mubr.msk.bf16.mxu0 %vm300_vm0, %v158_v37  ;;  %v171_v37 = vpack.c.bf16 %v67_v34, %v65_v33  ;;  %v174_v38 = vpack.c.bf16 %v72_v36, %v70_v35  ;;  %v112_v33 = vld [vmem:[%s2817_s0 + $0x2d8] sm:$0xff]  ;;  %v109_v36 = vld [vmem:[%s2817_s0 + $0x2c0] sm:$0xff] }
  0x49   :  { %462 = vmatmul.mubr.bf16.gmra.mxu0 %v157_v42  ;;  %v76_v42 = vld [vmem:[%s2817_s0 + $0x1b8] sm:$0xff] }
  0x4a   :  { %1519 = vmatprep.mubr.msk.bf16.mxu0 %vm300_vm0, %v160_v43  ;;  %v173_v43 = vpack.c.bf16 %v71_v40, %v69_v39  ;;  %v176_v44 = vpack.c.bf16 %v76_v42, %v74_v41  ;;  %v116_v39 = vld [vmem:[%s2817_s0 + $0x2f8] sm:$0xff]  ;;  %v113_v42 = vld [vmem:[%s2817_s0 + $0x2e0] sm:$0xff] }
  0x51   :  { %470 = vmatmul.mubr.bf16.gmra.mxu0 %v159_v48  ;;  %v80_v48 = vld [vmem:[%s2817_s0 + $0x1d8] sm:$0xff] }
  0x52   :  { %1520 = vmatprep.mubr.msk.bf16.mxu0 %vm300_vm0, %v162_v49  ;;  %v175_v49 = vpack.c.bf16 %v75_v46, %v73_v45  ;;  %v178_v50 = vpack.c.bf16 %v80_v48, %v78_v47  ;;  %v120_v45 = vld [vmem:[%s2817_s0 + $0x318] sm:$0xff]  ;;  %v117_v48 = vld [vmem:[%s2817_s0 + $0x300] sm:$0xff] }
  0x59   :  { %478 = vmatmul.mubr.bf16.gmra.mxu0 %v161_v57  ;;  %v81_v57 = vld [vmem:[%s2817_s0 + $0x1e0] sm:$0xff] }
  0x5a   :  { %1521 = vmatprep.mubr.msk.bf16.mxu0 %vm300_vm0, %v164_v58  ;;  %v83_v58 = vld [vmem:[%s2817_s0 + $0x1f0] sm:$0xff] }
  0x5b   :  { %v179_v61 = vpack.c.bf16 %v83_v58, %v81_v57  ;;  %v123_v57 = vld [vmem:[%s2817_s0 + $0x330] sm:$0xff] }
  0x61   :  { %486 = vmatmul.mubr.bf16.gmra.mxu0 %v163_v4  ;;  %v181_v4 = vpack.c.bf16 %v87_v1, %v85_v63 }
  0x62   :  { %1522 = vmatprep.mubr.msk.bf16.mxu0 %vm300_vm0, %v166_v5  ;;  %v184_v5 = vpack.c.bf16 %v92_v3, %v90_v2  ;;  %v202_v2 = vpack.c.bf16 %v128_v60, %v126_v59 }
  0x69   :  { %494 = vmatmul.mubr.bf16.gmra.mxu0 %v165_v14  ;;  %v98_v14 = vld [vmem:[%s2817_s0 + $0x268] sm:$0xff] }
  0x6a   :  { %1523 = vmatprep.mubr.msk.bf16.mxu0 %vm300_vm0, %v168_v15  ;;  %v100_v15 = vld [vmem:[%s2817_s0 + $0x278] sm:$0xff] }
  0x6b   :  { %v188_v17 = vpack.c.bf16 %v100_v15, %v98_v14  ;;  %v201_v15 = vpack.c.bf16 %v127_v9, %v125_v8  ;;  %v146_v9 = vld [vmem:[%s2817_s0 + $0x3e8] sm:$0xff] }
  0x71   :  { %502 = vmatmul.mubr.bf16.gmra.mxu0 %v167_v23  ;;  %v190_v23 = vpack.c.bf16 %v104_v21, %v102_v20 }
  0x72   :  { %1524 = vmatprep.mubr.msk.bf16.mxu0 %vm300_vm0, %v170_v24  ;;  %v101_v24 = vld [vmem:[%s2817_s0 + $0x280] sm:$0xff] }
  0x73   :  { %v189_v28 = vpack.c.bf16 %v103_v25, %v101_v24  ;;  %v131_v24 = vld [vmem:[%s2817_s0 + $0x370] sm:$0xff] }
  0x79   :  { %510 = vmatmul.mubr.bf16.gmra.mxu0 %v169_v31  ;;  %v107_v31 = vld [vmem:[%s2817_s0 + $0x2b0] sm:$0xff] }
  0x7a   :  { %1525 = vmatprep.mubr.msk.bf16.mxu0 %vm300_vm0, %v172_v32  ;;  %v110_v32 = vld [vmem:[%s2817_s0 + $0x2c8] sm:$0xff]  ;;  %v191_v34 = vpack.c.bf16 %v107_v31, %v105_v30 }
  0x7b   :  { %v194_v35 = vpack.c.bf16 %v112_v33, %v110_v32  ;;  %v206_v32 = vpack.c.bf16 %v136_v27, %v134_v26 }
  0x81   :  { %518 = vmatmul.mubr.bf16.gmra.mxu0 %v171_v37  ;;  %v111_v37 = vld [vmem:[%s2817_s0 + $0x2d0] sm:$0xff] }
  0x82   :  { %1526 = vmatprep.mubr.msk.bf16.mxu0 %vm300_vm0, %v174_v38  ;;  %v114_v38 = vld [vmem:[%s2817_s0 + $0x2e8] sm:$0xff]  ;;  %v193_v40 = vpack.c.bf16 %v111_v37, %v109_v36 }
  0x83   :  { %v196_v41 = vpack.c.bf16 %v116_v39, %v114_v38  ;;  %v133_v38 = vld [vmem:[%s2817_s0 + $0x380] sm:$0xff]  ;;  %v135_v39 = vld [vmem:[%s2817_s0 + $0x390] sm:$0xff] }
  0x89   :  { %526 = vmatmul.mubr.bf16.gmra.mxu0 %v173_v43  ;;  %v115_v43 = vld [vmem:[%s2817_s0 + $0x2f0] sm:$0xff] }
  0x8a   :  { %1527 = vmatprep.mubr.msk.bf16.mxu0 %vm300_vm0, %v176_v44  ;;  %v118_v44 = vld [vmem:[%s2817_s0 + $0x308] sm:$0xff]  ;;  %v195_v46 = vpack.c.bf16 %v115_v43, %v113_v42  ;;  %v140_v42 = vld [vmem:[%s2817_s0 + $0x3b8] sm:$0xff] }
  0x8b   :  { %v198_v47 = vpack.c.bf16 %v120_v45, %v118_v44  ;;  %v205_v45 = vpack.c.bf16 %v135_v39, %v133_v38 }
  0x91   :  { %534 = vmatmul.mubr.bf16.gmra.mxu0 %v175_v49  ;;  %v119_v49 = vld [vmem:[%s2817_s0 + $0x310] sm:$0xff] }
  0x92   :  { %1528 = vmatprep.mubr.msk.bf16.mxu0 %vm300_vm0, %v178_v50  ;;  %v122_v50 = vld [vmem:[%s2817_s0 + $0x328] sm:$0xff]  ;;  %v197_v52 = vpack.c.bf16 %v119_v49, %v117_v48 }
  0x93   :  { %v200_v53 = vpack.c.bf16 %v124_v51, %v122_v50 }
  0x99   :  { %542 = vmatmul.mubr.bf16.gmra.mxu0 %v177_v55 }
  0x9a   :  { %1529 = vmatprep.mubr.msk.bf16.mxu0 %vm300_vm0, %v180_v56  ;;  %v121_v56 = vld [vmem:[%s2817_s0 + $0x320] sm:$0xff] }
  0x9b   :  { %v199_v63 = vpack.c.bf16 %v123_v57, %v121_v56  ;;  %v142_v57 = vld [vmem:[%s2817_s0 + $0x3c8] sm:$0xff] }
  0xa1   :  { %550 = vmatmul.mubr.bf16.gmra.mxu0 %v179_v61 }
  0xa2   :  { %1530 = vmatprep.mubr.msk.bf16.mxu0 %vm300_vm0, %v182_v62 }
  0xa9   :  { %558 = vmatmul.mubr.bf16.gmra.mxu0 %v181_v4 }
  0xaa   :  { %1531 = vmatprep.mubr.msk.bf16.mxu0 %vm300_vm0, %v184_v5 }
  0xb1   :  { %566 = vmatmul.mubr.bf16.gmra.mxu0 %v183_v10 }
  0xb2   :  { %1532 = vmatprep.mubr.msk.bf16.mxu0 %vm300_vm0, %v186_v11  ;;  %v130_v11 = vld [vmem:[%s2817_s0 + $0x368] sm:$0xff] }
  0xb9   :  { %574 = vmatmul.mubr.bf16.gmra.mxu0 %v185_v16 }
  0xba   :  { %1533 = vmatprep.mubr.msk.bf16.mxu0 %vm300_vm0, %v188_v17  ;;  %v204_v17 = vpack.c.bf16 %v132_v12, %v130_v11 }
  0xc1   :  { %582 = vmatmul.mubr.bf16.gmra.mxu0 %v187_v22 }
  0xc2   :  { %1534 = vmatprep.mubr.msk.bf16.mxu0 %vm300_vm0, %v190_v23  ;;  %v129_v23 = vld [vmem:[%s2817_s0 + $0x360] sm:$0xff] }
  0xc3   :  { %v203_v30 = vpack.c.bf16 %v131_v24, %v129_v23 }
  0xc9   :  { %590 = vmatmul.mubr.bf16.gmra.mxu0 %v189_v28 }
  0xca   :  { %1535 = vmatprep.mubr.msk.bf16.mxu0 %vm300_vm0, %v192_v29 }
  0xd1   :  { %598 = vmatmul.mubr.bf16.gmra.mxu0 %v191_v34 }
  0xd2   :  { %1536 = vmatprep.mubr.msk.bf16.mxu0 %vm300_vm0, %v194_v35 }
  0xd9   :  { %606 = vmatmul.mubr.bf16.gmra.mxu0 %v193_v40 }
  0xda   :  { %1537 = vmatprep.mubr.msk.bf16.mxu0 %vm300_vm0, %v196_v41  ;;  %v138_v41 = vld [vmem:[%s2817_s0 + $0x3a8] sm:$0xff] }
  0xe1   :  { %614 = vmatmul.mubr.bf16.gmra.mxu0 %v195_v46 }
  0xe2   :  { %1538 = vmatprep.mubr.msk.bf16.mxu0 %vm300_vm0, %v198_v47  ;;  %v208_v47 = vpack.c.bf16 %v140_v42, %v138_v41 }
  0xe9   :  { %v431_v55 = vpop.f32.mrf.mxu0  ;;  %622 = vmatmul.mubr.bf16.gmra.mxu0 %v197_v52 }
  0xea   :  { %1539 = vmatprep.mubr.msk.bf16.mxu0 %vm300_vm0, %v200_v53  ;;  %v432_v61 = vadd.f32 %v2051_v54, %v431_v55  ;;  %v137_v53 = vld [vmem:[%s2817_s0 + $0x3a0] sm:$0xff]  ;;  %v139_v55 = vld [vmem:[%s2817_s0 + $0x3b0] sm:$0xff] }
  0xeb   :  { %v433_v58 = vpop.f32.mrf.mxu0 }
  0xec   :  { %v686_v4 = vmax.f32 %v432_v61, 0.0  ;;  %v144_v58 = vld [vmem:[%s2817_s0 + $0x3d8] sm:$0xff]  ;;  %v207_v61 = vpack.c.bf16 %v139_v55, %v137_v53 }
  0xed   :  { %v434_v62 = vpop.f32.mrf.mxu0 }
  0xee   :  { %v435_v1 = vadd.f32 %v2051_v54, %v434_v62 }
  0xef   :  { %v436_v3 = vpop.f32.mrf.mxu0 }
  0xf0   :  { %v687_v5 = vmax.f32 %v435_v1, 0.0 }
  0xf1   :  { %v439_v6 = vpop.f32.mrf.mxu0  ;;  %630 = vmatmul.mubr.bf16.gmra.mxu0 %v199_v63  ;;  %v210_v63 = vpack.c.bf16 %v144_v58, %v142_v57 }
  0xf2   :  { %v750_v7 = vpack.c.bf16 %v687_v5, %v686_v4  ;;  %1540 = vmatprep.mubr.msk.bf16.mxu0 %vm300_vm0, %v202_v2  ;;  %v440_v13 = vadd.f32 %v2051_v54, %v439_v6  ;;  %v141_v6 = vld [vmem:[%s2817_s0 + $0x3c0] sm:$0xff] }
  0xf3   :  { %v441_v10 = vpop.f32.mrf.mxu0 }
  0xf4   :  { %923 = vmatmul.mubr.bf16.vlgmr.msra.gmra.mxu1 %v750_v7  ;;  %v688_v19 = vmax.f32 %v440_v13, 0.0  ;;  %v143_v7 = vld [vmem:[%s2817_s0 + $0x3d0] sm:$0xff]  ;;  %v148_v10 = vld [vmem:[%s2817_s0 + $0x3f8] sm:$0xff] }
  0xf5   :  { %v442_v14 = vpop.f32.mrf.mxu0  ;;  %932 = vmatprep.mubr.bf16.mxu1 %v1597_v0  ;;  %v209_v13 = vpack.c.bf16 %v143_v7, %v141_v6 }
  0xf6   :  { %v443_v16 = vadd.f32 %v2051_v54, %v442_v14 }
  0xf7   :  { %v444_v18 = vpop.f32.mrf.mxu0 }
  0xf8   :  { %v689_v20 = vmax.f32 %v443_v16, 0.0 }
  0xf9   :  { %v447_v21 = vpop.f32.mrf.mxu0  ;;  %638 = vmatmul.mubr.bf16.gmra.mxu0 %v201_v15  ;;  %v212_v15 = vpack.c.bf16 %v148_v10, %v146_v9 }
  0xfa   :  { %v751_v22 = vpack.c.bf16 %v689_v20, %v688_v19  ;;  %1541 = vmatprep.mubr.msk.bf16.mxu0 %vm300_vm0, %v204_v17  ;;  %v448_v28 = vadd.f32 %v2051_v54, %v447_v21  ;;  %v145_v21 = vld [vmem:[%s2817_s0 + $0x3e0] sm:$0xff] }
  0xfb   :  { %v449_v25 = vpop.f32.mrf.mxu0 }
  0xfc   :  { %933 = vmatmul.mubr.bf16.gmra.mxu1 %v751_v22  ;;  %v690_v34 = vmax.f32 %v448_v28, 0.0  ;;  %v147_v22 = vld [vmem:[%s2817_s0 + $0x3f0] sm:$0xff] }
  0xfd   :  { %v450_v29 = vpop.f32.mrf.mxu0  ;;  %942 = vmatprep.mubr.bf16.mxu1 %v1597_v0  ;;  %v211_v26 = vpack.c.bf16 %v147_v22, %v145_v21 }
  0xfe   :  { %v451_v31 = vadd.f32 %v2051_v54, %v450_v29 }
  0xff   :  { %v452_v33 = vpop.f32.mrf.mxu0 }
 0x100   :  { %v691_v35 = vmax.f32 %v451_v31, 0.0 }
 0x101   :  { %v455_v36 = vpop.f32.mrf.mxu0  ;;  %646 = vmatmul.mubr.bf16.gmra.mxu0 %v203_v30 }
 0x102   :  { %v752_v37 = vpack.c.bf16 %v691_v35, %v690_v34  ;;  %1542 = vmatprep.mubr.msk.bf16.mxu0 %vm300_vm0, %v206_v32  ;;  %v456_v43 = vadd.f32 %v2051_v54, %v455_v36 }
 0x103   :  { %v457_v40 = vpop.f32.mrf.mxu0 }
 0x104   :  { %943 = vmatmul.mubr.bf16.gmra.mxu1 %v752_v37  ;;  %v692_v49 = vmax.f32 %v456_v43, 0.0 }
 0x105   :  { %v458_v44 = vpop.f32.mrf.mxu0  ;;  %952 = vmatprep.mubr.bf16.mxu1 %v1597_v0 }
 0x106   :  { %v459_v46 = vadd.f32 %v2051_v54, %v458_v44 }
 0x107   :  { %v460_v48 = vpop.f32.mrf.mxu0 }
 0x108   :  { %v693_v50 = vmax.f32 %v459_v46, 0.0 }
 0x109   :  { %v463_v51 = vpop.f32.mrf.mxu0  ;;  %654 = vmatmul.mubr.bf16.gmra.mxu0 %v205_v45 }
 0x10a   :  { %v753_v52 = vpack.c.bf16 %v693_v50, %v692_v49  ;;  %1543 = vmatprep.mubr.msk.bf16.mxu0 %vm300_vm0, %v208_v47  ;;  %v464_v59 = vadd.f32 %v2051_v54, %v463_v51 }
 0x10b   :  { %v465_v56 = vpop.f32.mrf.mxu0 }
 0x10c   :  { %953 = vmatmul.mubr.bf16.gmra.mxu1 %v753_v52  ;;  %v694_v2 = vmax.f32 %v464_v59, 0.0 }
 0x10d   :  { %v466_v60 = vpop.f32.mrf.mxu0  ;;  %962 = vmatprep.mubr.bf16.mxu1 %v1597_v0 }
 0x10e   :  { %v467_v62 = vadd.f32 %v2051_v54, %v466_v60 }
 0x10f   :  { %v468_v1 = vpop.f32.mrf.mxu0 }
 0x110   :  { %v695_v3 = vmax.f32 %v467_v62, 0.0 }
 0x111   :  { %v471_v4 = vpop.f32.mrf.mxu0  ;;  %662 = vmatmul.mubr.bf16.gmra.mxu0 %v207_v61 }
 0x112   :  { %v754_v5 = vpack.c.bf16 %v695_v3, %v694_v2  ;;  %1544 = vmatprep.mubr.msk.bf16.mxu0 %vm300_vm0, %v210_v63  ;;  %v472_v11 = vadd.f32 %v2051_v54, %v471_v4 }
 0x113   :  { %v473_v8 = vpop.f32.mrf.mxu0 }
 0x114   :  { %963 = vmatmul.mubr.bf16.gmra.mxu1 %v754_v5  ;;  %v696_v17 = vmax.f32 %v472_v11, 0.0 }
 0x115   :  { %v474_v12 = vpop.f32.mrf.mxu0  ;;  %972 = vmatprep.mubr.bf16.mxu1 %v1597_v0 }
 0x116   :  { %v475_v14 = vadd.f32 %v2051_v54, %v474_v12 }
 0x117   :  { %v476_v16 = vpop.f32.mrf.mxu0 }
 0x118   :  { %v697_v18 = vmax.f32 %v475_v14, 0.0 }
 0x119   :  { %v479_v19 = vpop.f32.mrf.mxu0  ;;  %670 = vmatmul.mubr.bf16.gmra.mxu0 %v209_v13 }
 0x11a   :  { %v755_v20 = vpack.c.bf16 %v697_v18, %v696_v17  ;;  %1545 = vmatprep.mubr.msk.bf16.mxu0 %vm300_vm0, %v212_v15  ;;  %v480_v24 = vadd.f32 %v2051_v54, %v479_v19 }
 0x11b   :  { %v481_v23 = vpop.f32.mrf.mxu0 }
 0x11c   :  { %973 = vmatmul.mubr.bf16.gmra.mxu1 %v755_v20  ;;  %v698_v29 = vmax.f32 %v480_v24, 0.0 }
 0x11d   :  { %v482_v25 = vpop.f32.mrf.mxu0  ;;  %982 = vmatprep.mubr.bf16.mxu1 %v1597_v0 }
 0x11e   :  { %v483_v27 = vadd.f32 %v2051_v54, %v482_v25 }
 0x11f   :  { %v484_v28 = vpop.f32.mrf.mxu0 }
 0x120   :  { %v699_v30 = vmax.f32 %v483_v27, 0.0 }
 0x121   :  { %v487_v31 = vpop.f32.mrf.mxu0  ;;  %678 = vmatmul.mubr.bf16.gmra.mxu0 %v211_v26 }
 0x122   :  { %v756_v32 = vpack.c.bf16 %v699_v30, %v698_v29  ;;  %v488_v34 = vadd.f32 %v2051_v54, %v487_v31 }
 0x123   :  { %v489_v33 = vpop.f32.mrf.mxu0 }
 0x124   :  { %983 = vmatmul.mubr.bf16.gmra.mxu1 %v756_v32  ;;  %v700_v38 = vmax.f32 %v488_v34, 0.0 }
 0x125   :  { %v490_v35 = vpop.f32.mrf.mxu0  ;;  %992 = vmatprep.mubr.bf16.mxu1 %v1597_v0 }
 0x126   :  { %v491_v36 = vadd.f32 %v2051_v54, %v490_v35 }
 0x127   :  { %v492_v37 = vpop.f32.mrf.mxu0 }
 0x128   :  { %v701_v39 = vmax.f32 %v491_v36, 0.0 }
 0x129   :  { %v495_v40 = vpop.f32.mrf.mxu0 }
 0x12a   :  { %v757_v41 = vpack.c.bf16 %v701_v39, %v700_v38  ;;  %v496_v43 = vadd.f32 %v2051_v54, %v495_v40 }
 0x12b   :  { %v497_v42 = vpop.f32.mrf.mxu0 }
 0x12c   :  { %993 = vmatmul.mubr.bf16.gmra.mxu1 %v757_v41  ;;  %v702_v47 = vmax.f32 %v496_v43, 0.0 }
 0x12d   :  { %v498_v44 = vpop.f32.mrf.mxu0  ;;  %1002 = vmatprep.mubr.bf16.mxu1 %v1597_v0 }
 0x12e   :  { %v499_v45 = vadd.f32 %v2051_v54, %v498_v44 }
 0x12f   :  { %v500_v46 = vpop.f32.mrf.mxu0 }
 0x130   :  { %v703_v48 = vmax.f32 %v499_v45, 0.0 }
 0x131   :  { %v503_v49 = vpop.f32.mrf.mxu0 }
 0x132   :  { %v758_v50 = vpack.c.bf16 %v703_v48, %v702_v47  ;;  %v504_v52 = vadd.f32 %v2051_v54, %v503_v49 }
 0x133   :  { %v505_v51 = vpop.f32.mrf.mxu0 }
 0x134   :  { %1003 = vmatmul.mubr.bf16.gmra.mxu1 %v758_v50  ;;  %v704_v57 = vmax.f32 %v504_v52, 0.0 }
 0x135   :  { %v506_v53 = vpop.f32.mrf.mxu0  ;;  %1012 = vmatprep.mubr.bf16.mxu1 %v1597_v0 }
 0x136   :  { %v507_v55 = vadd.f32 %v2051_v54, %v506_v53 }
 0x137   :  { %v508_v56 = vpop.f32.mrf.mxu0 }
 0x138   :  { %v705_v58 = vmax.f32 %v507_v55, 0.0 }
 0x139   :  { %v511_v59 = vpop.f32.mrf.mxu0 }
 0x13a   :  { %v759_v60 = vpack.c.bf16 %v705_v58, %v704_v57  ;;  %v512_v62 = vadd.f32 %v2051_v54, %v511_v59 }
 0x13b   :  { %v513_v61 = vpop.f32.mrf.mxu0 }
 0x13c   :  { %1013 = vmatmul.mubr.bf16.gmra.mxu1 %v759_v60  ;;  %v706_v3 = vmax.f32 %v512_v62, 0.0 }
 0x13d   :  { %v514_v63 = vpop.f32.mrf.mxu0  ;;  %1022 = vmatprep.mubr.bf16.mxu1 %v1597_v0 }
 0x13e   :  { %v515_v1 = vadd.f32 %v2051_v54, %v514_v63 }
 0x13f   :  { %v516_v2 = vpop.f32.mrf.mxu0 }
 0x140   :  { %v707_v4 = vmax.f32 %v515_v1, 0.0 }
 0x141   :  { %v519_v5 = vpop.f32.mrf.mxu0 }
 0x142   :  { %v760_v6 = vpack.c.bf16 %v707_v4, %v706_v3  ;;  %v520_v8 = vadd.f32 %v2051_v54, %v519_v5 }
 0x143   :  { %v521_v7 = vpop.f32.mrf.mxu0 }
 0x144   :  { %1023 = vmatmul.mubr.bf16.gmra.mxu1 %v760_v6  ;;  %v708_v12 = vmax.f32 %v520_v8, 0.0 }
 0x145   :  { %v522_v9 = vpop.f32.mrf.mxu0  ;;  %1032 = vmatprep.mubr.bf16.mxu1 %v1597_v0 }
 0x146   :  { %v523_v10 = vadd.f32 %v2051_v54, %v522_v9 }
 0x147   :  { %v524_v11 = vpop.f32.mrf.mxu0 }
 0x148   :  { %v709_v13 = vmax.f32 %v523_v10, 0.0 }
 0x149   :  { %v527_v14 = vpop.f32.mrf.mxu0 }
 0x14a   :  { %v761_v15 = vpack.c.bf16 %v709_v13, %v708_v12  ;;  %v528_v17 = vadd.f32 %v2051_v54, %v527_v14 }
 0x14b   :  { %v529_v16 = vpop.f32.mrf.mxu0 }
 0x14c   :  { %1033 = vmatmul.mubr.bf16.gmra.mxu1 %v761_v15  ;;  %v710_v21 = vmax.f32 %v528_v17, 0.0 }
 0x14d   :  { %v530_v18 = vpop.f32.mrf.mxu0  ;;  %1042 = vmatprep.mubr.bf16.mxu1 %v1597_v0 }
 0x14e   :  { %v531_v19 = vadd.f32 %v2051_v54, %v530_v18 }
 0x14f   :  { %v532_v20 = vpop.f32.mrf.mxu0 }
 0x150   :  { %v711_v22 = vmax.f32 %v531_v19, 0.0 }
 0x151   :  { %v535_v23 = vpop.f32.mrf.mxu0 }
 0x152   :  { %v762_v24 = vpack.c.bf16 %v711_v22, %v710_v21  ;;  %v536_v26 = vadd.f32 %v2051_v54, %v535_v23 }
 0x153   :  { %v537_v25 = vpop.f32.mrf.mxu0 }
 0x154   :  { %1043 = vmatmul.mubr.bf16.gmra.mxu1 %v762_v24  ;;  %v712_v30 = vmax.f32 %v536_v26, 0.0 }
 0x155   :  { %v538_v27 = vpop.f32.mrf.mxu0  ;;  %1052 = vmatprep.mubr.bf16.mxu1 %v1597_v0 }
 0x156   :  { %v539_v28 = vadd.f32 %v2051_v54, %v538_v27 }
 0x157   :  { %v540_v29 = vpop.f32.mrf.mxu0 }
 0x158   :  { %v713_v31 = vmax.f32 %v539_v28, 0.0 }
 0x159   :  { %v543_v32 = vpop.f32.mrf.mxu0 }
 0x15a   :  { %v763_v33 = vpack.c.bf16 %v713_v31, %v712_v30  ;;  %v544_v35 = vadd.f32 %v2051_v54, %v543_v32 }
 0x15b   :  { %v545_v34 = vpop.f32.mrf.mxu0 }
 0x15c   :  { %1053 = vmatmul.mubr.bf16.gmra.mxu1 %v763_v33  ;;  %v714_v39 = vmax.f32 %v544_v35, 0.0 }
 0x15d   :  { %v546_v36 = vpop.f32.mrf.mxu0  ;;  %1062 = vmatprep.mubr.bf16.mxu1 %v1597_v0 }
 0x15e   :  { %v547_v37 = vadd.f32 %v2051_v54, %v546_v36 }
 0x15f   :  { %v548_v38 = vpop.f32.mrf.mxu0 }
 0x160   :  { %v715_v40 = vmax.f32 %v547_v37, 0.0 }
 0x161   :  { %v551_v41 = vpop.f32.mrf.mxu0 }
 0x162   :  { %v764_v42 = vpack.c.bf16 %v715_v40, %v714_v39  ;;  %v552_v44 = vadd.f32 %v2051_v54, %v551_v41 }
 0x163   :  { %v553_v43 = vpop.f32.mrf.mxu0 }
 0x164   :  { %1063 = vmatmul.mubr.bf16.gmra.mxu1 %v764_v42  ;;  %v716_v48 = vmax.f32 %v552_v44, 0.0 }
 0x165   :  { %v554_v45 = vpop.f32.mrf.mxu0  ;;  %1072 = vmatprep.mubr.bf16.mxu1 %v1597_v0 }
 0x166   :  { %v555_v46 = vadd.f32 %v2051_v54, %v554_v45 }
 0x167   :  { %v556_v47 = vpop.f32.mrf.mxu0 }
 0x168   :  { %v717_v49 = vmax.f32 %v555_v46, 0.0 }
 0x169   :  { %v559_v50 = vpop.f32.mrf.mxu0 }
 0x16a   :  { %v765_v51 = vpack.c.bf16 %v717_v49, %v716_v48  ;;  %v560_v53 = vadd.f32 %v2051_v54, %v559_v50 }
 0x16b   :  { %v561_v52 = vpop.f32.mrf.mxu0 }
 0x16c   :  { %1073 = vmatmul.mubr.bf16.gmra.mxu1 %v765_v51  ;;  %v718_v58 = vmax.f32 %v560_v53, 0.0 }
 0x16d   :  { %v562_v55 = vpop.f32.mrf.mxu0  ;;  %1082 = vmatprep.mubr.bf16.mxu1 %v1597_v0 }
 0x16e   :  { %v563_v56 = vadd.f32 %v2051_v54, %v562_v55 }
 0x16f   :  { %v564_v57 = vpop.f32.mrf.mxu0 }
 0x170   :  { %v719_v59 = vmax.f32 %v563_v56, 0.0  ;;  %v800_v57 = vlaneseq }
 0x171   :  { %v567_v60 = vpop.f32.mrf.mxu0 }
 0x172   :  { %v766_v61 = vpack.c.bf16 %v719_v59, %v718_v58  ;;  %v568_v63 = vadd.f32 %v2051_v54, %v567_v60 }
 0x173   :  { %v569_v62 = vpop.f32.mrf.mxu0 }
 0x174   :  { %1083 = vmatmul.mubr.bf16.gmra.mxu1 %v766_v61  ;;  %v720_v4 = vmax.f32 %v568_v63, 0.0  ;;  %v801_v63 = vshrl.u32 %v800_v57, 7 }
 0x175   :  { %v570_v1 = vpop.f32.mrf.mxu0  ;;  %1092 = vmatprep.mubr.bf16.mxu1 %v1597_v0 }
 0x176   :  { %v571_v2 = vadd.f32 %v2051_v54, %v570_v1 }
 0x177   :  { %v572_v3 = vpop.f32.mrf.mxu0 }
 0x178   :  { %v721_v5 = vmax.f32 %v571_v2, 0.0 }
 0x179   :  { %v575_v6 = vpop.f32.mrf.mxu0 }
 0x17a   :  { %v767_v7 = vpack.c.bf16 %v721_v5, %v720_v4  ;;  %v576_v9 = vadd.f32 %v2051_v54, %v575_v6  ;;  %v802_v5 = vsub.s32 0, %v801_v63 }
 0x17b   :  { %v577_v8 = vpop.f32.mrf.mxu0 }
 0x17c   :  { %1093 = vmatmul.mubr.bf16.gmra.mxu1 %v767_v7  ;;  %v722_v13 = vmax.f32 %v576_v9, 0.0  ;;  %v798_v7 = vld [vmem:[%s2820_s4] sm:$0x3]  ;;  %v806_v9 = vsub.s32 1, %v801_v63 }
 0x17d   :  { %v578_v10 = vpop.f32.mrf.mxu0  ;;  %1102 = vmatprep.mubr.bf16.mxu1 %v1597_v0 }
 0x17e   :  { %v579_v11 = vadd.f32 %v2051_v54, %v578_v10 }
 0x17f   :  { %v580_v12 = vpop.f32.mrf.mxu0 }
 0x180   :  { %v723_v14 = vmax.f32 %v579_v11, 0.0 }
 0x181   :  { %v583_v15 = vpop.f32.mrf.mxu0 }
 0x182   :  { %v768_v16 = vpack.c.bf16 %v723_v14, %v722_v13  ;;  %v584_v18 = vadd.f32 %v2051_v54, %v583_v15  ;;  %v2215_v13 = vrot.slane %v798_v7, %v802_v5 }
 0x183   :  { %v585_v17 = vpop.f32.mrf.mxu0 }
 0x184   :  { %1103 = vmatmul.mubr.bf16.gmra.mxu1 %v768_v16  ;;  %v724_v22 = vmax.f32 %v584_v18, 0.0  ;;  %v2217_v16 = vrot.slane %v798_v7, %v806_v9 }
 0x185   :  { %v586_v19 = vpop.f32.mrf.mxu0  ;;  %1112 = vmatprep.mubr.bf16.mxu1 %v1597_v0 }
 0x186   :  { %v587_v20 = vadd.f32 %v2051_v54, %v586_v19 }
 0x187   :  { %v588_v21 = vpop.f32.mrf.mxu0 }
 0x188   :  { %v725_v23 = vmax.f32 %v587_v20, 0.0 }
 0x189   :  { %v591_v24 = vpop.f32.mrf.mxu0 }
 0x18a   :  { %v769_v25 = vpack.c.bf16 %v725_v23, %v724_v22  ;;  %v592_v27 = vadd.f32 %v2051_v54, %v591_v24 }
 0x18b   :  { %v593_v26 = vpop.f32.mrf.mxu0 }
 0x18c   :  { %1113 = vmatmul.mubr.bf16.gmra.mxu1 %v769_v25  ;;  %v726_v31 = vmax.f32 %v592_v27, 0.0 }
 0x18d   :  { %v594_v28 = vpop.f32.mrf.mxu0  ;;  %1122 = vmatprep.mubr.bf16.mxu1 %v1597_v0 }
 0x18e   :  { %v595_v29 = vadd.f32 %v2051_v54, %v594_v28 }
 0x18f   :  { %v596_v30 = vpop.f32.mrf.mxu0 }
 0x190   :  { %v727_v32 = vmax.f32 %v595_v29, 0.0 }
 0x191   :  { %v599_v33 = vpop.f32.mrf.mxu0 }
 0x192   :  { %v770_v34 = vpack.c.bf16 %v727_v32, %v726_v31  ;;  %v600_v36 = vadd.f32 %v2051_v54, %v599_v33 }
 0x193   :  { %v601_v35 = vpop.f32.mrf.mxu0 }
 0x194   :  { %1123 = vmatmul.mubr.bf16.gmra.mxu1 %v770_v34  ;;  %v728_v40 = vmax.f32 %v600_v36, 0.0 }
 0x195   :  { %v602_v37 = vpop.f32.mrf.mxu0  ;;  %1132 = vmatprep.mubr.bf16.mxu1 %v1597_v0 }
 0x196   :  { %v603_v38 = vadd.f32 %v2051_v54, %v602_v37 }
 0x197   :  { %v604_v39 = vpop.f32.mrf.mxu0 }
 0x198   :  { %v729_v41 = vmax.f32 %v603_v38, 0.0 }
 0x199   :  { %v607_v42 = vpop.f32.mrf.mxu0 }
 0x19a   :  { %v771_v43 = vpack.c.bf16 %v729_v41, %v728_v40  ;;  %v608_v45 = vadd.f32 %v2051_v54, %v607_v42 }
 0x19b   :  { %v609_v44 = vpop.f32.mrf.mxu0 }
 0x19c   :  { %1133 = vmatmul.mubr.bf16.gmra.mxu1 %v771_v43  ;;  %v730_v49 = vmax.f32 %v608_v45, 0.0 }
 0x19d   :  { %v610_v46 = vpop.f32.mrf.mxu0  ;;  %1142 = vmatprep.mubr.bf16.mxu1 %v1597_v0 }
 0x19e   :  { %v611_v47 = vadd.f32 %v2051_v54, %v610_v46 }
 0x19f   :  { %v612_v48 = vpop.f32.mrf.mxu0 }
 0x1a0   :  { %v731_v50 = vmax.f32 %v611_v47, 0.0 }
 0x1a1   :  { %v615_v51 = vpop.f32.mrf.mxu0 }
 0x1a2   :  { %v772_v52 = vpack.c.bf16 %v731_v50, %v730_v49  ;;  %v616_v55 = vadd.f32 %v2051_v54, %v615_v51 }
 0x1a3   :  { %v617_v53 = vpop.f32.mrf.mxu0 }
 0x1a4   :  { %1143 = vmatmul.mubr.bf16.gmra.mxu1 %v772_v52  ;;  %v732_v60 = vmax.f32 %v616_v55, 0.0 }
 0x1a5   :  { %v618_v56 = vpop.f32.mrf.mxu0  ;;  %1152 = vmatprep.mubr.bf16.mxu1 %v1597_v0 }
 0x1a6   :  { %v619_v58 = vadd.f32 %v2051_v54, %v618_v56 }
 0x1a7   :  { %v620_v59 = vpop.f32.mrf.mxu0 }
 0x1a8   :  { %v733_v61 = vmax.f32 %v619_v58, 0.0 }
 0x1a9   :  { %v623_v62 = vpop.f32.mrf.mxu0 }
 0x1aa   :  { %v773_v1 = vpack.c.bf16 %v733_v61, %v732_v60  ;;  %v624_v3 = vadd.f32 %v2051_v54, %v623_v62 }
 0x1ab   :  { %v625_v2 = vpop.f32.mrf.mxu0 }
 0x1ac   :  { %1153 = vmatmul.mubr.bf16.gmra.mxu1 %v773_v1  ;;  %v734_v10 = vmax.f32 %v624_v3, 0.0 }
 0x1ad   :  { %v626_v4 = vpop.f32.mrf.mxu0  ;;  %1162 = vmatprep.mubr.bf16.mxu1 %v1597_v0 }
 0x1ae   :  { %v627_v6 = vadd.f32 %v2051_v54, %v626_v4 }
 0x1af   :  { %v628_v8 = vpop.f32.mrf.mxu0 }
 0x1b0   :  { %v735_v11 = vmax.f32 %v627_v6, 0.0 }
 0x1b1   :  { %v631_v12 = vpop.f32.mrf.mxu0 }
 0x1b2   :  { %v774_v14 = vpack.c.bf16 %v735_v11, %v734_v10  ;;  %v632_v17 = vadd.f32 %v2051_v54, %v631_v12 }
 0x1b3   :  { %v633_v15 = vpop.f32.mrf.mxu0 }
 0x1b4   :  { %v924_v18 = vpop.f32.mrf.mxu1  ;;  %1163 = vmatmul.mubr.bf16.gmra.mxu1 %v774_v14  ;;  %v736_v26 = vmax.f32 %v632_v17, 0.0 }
 0x1b5   :  { %v925_v19 = vadd.f32 %v924_v18, %v2215_v13  ;;  %v634_v20 = vpop.f32.mrf.mxu0  ;;  %1172 = vmatprep.mubr.bf16.mxu1 %v1597_v0 }
 0x1b6   :  { %v635_v21 = vadd.f32 %v2051_v54, %v634_v20  ;;  %v926_v22 = vpop.f32.mrf.mxu1 }
 0x1b7   :  { %v1243_v23 = vmax.f32 %v925_v19, 0.0  ;;  %v927_v24 = vadd.f32 %v926_v22, %v2217_v16  ;;  %v636_v25 = vpop.f32.mrf.mxu0 }
 0x1b8   :  { %v737_v27 = vmax.f32 %v635_v21, 0.0  ;;  %v928_v28 = vpop.f32.mrf.mxu1 }
 0x1b9   :  { %1371 = vst [vmem:[%s2821_s5] sm:$0xff] %v1243_v23  ;;  %v1244_v29 = vmax.f32 %v927_v24, 0.0  ;;  %v929_v30 = vadd.f32 %v928_v28, %v2215_v13  ;;  %v639_v31 = vpop.f32.mrf.mxu0 }
 0x1ba   :  { %v775_v32 = vpack.c.bf16 %v737_v27, %v736_v26  ;;  %v930_v33 = vpop.f32.mrf.mxu1  ;;  %v640_v37 = vadd.f32 %v2051_v54, %v639_v31 }
 0x1bb   :  { %1372 = vst.msk [vmem:[%s2821_s5 + $0x8] sm:$0xff] %vm300_vm0, %v1244_v29  ;;  %v1245_v34 = vmax.f32 %v929_v30, 0.0  ;;  %v931_v35 = vadd.f32 %v930_v33, %v2217_v16  ;;  %v641_v36 = vpop.f32.mrf.mxu0 }
 0x1bc   :  { %v934_v38 = vpop.f32.mrf.mxu1  ;;  %1173 = vmatmul.mubr.bf16.gmra.mxu1 %v775_v32  ;;  %v738_v47 = vmax.f32 %v640_v37, 0.0 }
 0x1bd   :  { %1373 = vst [vmem:[%s2821_s5 + $0x10] sm:$0xff] %v1245_v34  ;;  %v1246_v39 = vmax.f32 %v931_v35, 0.0  ;;  %v935_v40 = vadd.f32 %v934_v38, %v2215_v13  ;;  %v642_v41 = vpop.f32.mrf.mxu0  ;;  %1182 = vmatprep.mubr.bf16.mxu1 %v1597_v0 }
 0x1be   :  { %v643_v42 = vadd.f32 %v2051_v54, %v642_v41  ;;  %v936_v43 = vpop.f32.mrf.mxu1 }
 0x1bf   :  { %1374 = vst.msk [vmem:[%s2821_s5 + $0x18] sm:$0xff] %vm300_vm0, %v1246_v39  ;;  %v1247_v44 = vmax.f32 %v935_v40, 0.0  ;;  %v937_v45 = vadd.f32 %v936_v43, %v2217_v16  ;;  %v644_v46 = vpop.f32.mrf.mxu0 }
 0x1c0   :  { %v739_v48 = vmax.f32 %v643_v42, 0.0  ;;  %v938_v49 = vpop.f32.mrf.mxu1 }
 0x1c1   :  { %1375 = vst [vmem:[%s2821_s5 + $0x20] sm:$0xff] %v1247_v44  ;;  %v1248_v50 = vmax.f32 %v937_v45, 0.0  ;;  %v939_v51 = vadd.f32 %v938_v49, %v2215_v13  ;;  %v647_v52 = vpop.f32.mrf.mxu0 }
 0x1c2   :  { %v776_v53 = vpack.c.bf16 %v739_v48, %v738_v47  ;;  %v940_v55 = vpop.f32.mrf.mxu1  ;;  %v648_v59 = vadd.f32 %v2051_v54, %v647_v52 }
 0x1c3   :  { %1376 = vst.msk [vmem:[%s2821_s5 + $0x28] sm:$0xff] %vm300_vm0, %v1248_v50  ;;  %v1249_v56 = vmax.f32 %v939_v51, 0.0  ;;  %v941_v57 = vadd.f32 %v940_v55, %v2217_v16  ;;  %v649_v58 = vpop.f32.mrf.mxu0 }
 0x1c4   :  { %v944_v60 = vpop.f32.mrf.mxu1  ;;  %1183 = vmatmul.mubr.bf16.gmra.mxu1 %v776_v53  ;;  %v740_v6 = vmax.f32 %v648_v59, 0.0 }
 0x1c5   :  { %1377 = vst [vmem:[%s2821_s5 + $0x30] sm:$0xff] %v1249_v56  ;;  %v1250_v61 = vmax.f32 %v941_v57, 0.0  ;;  %v945_v62 = vadd.f32 %v944_v60, %v2215_v13  ;;  %v650_v63 = vpop.f32.mrf.mxu0  ;;  %1192 = vmatprep.mubr.bf16.mxu1 %v1597_v0 }
 0x1c6   :  { %v651_v1 = vadd.f32 %v2051_v54, %v650_v63  ;;  %v946_v2 = vpop.f32.mrf.mxu1 }
 0x1c7   :  { %1378 = vst.msk [vmem:[%s2821_s5 + $0x38] sm:$0xff] %vm300_vm0, %v1250_v61  ;;  %v1251_v3 = vmax.f32 %v945_v62, 0.0  ;;  %v947_v4 = vadd.f32 %v946_v2, %v2217_v16  ;;  %v652_v5 = vpop.f32.mrf.mxu0 }
 0x1c8   :  { %v741_v7 = vmax.f32 %v651_v1, 0.0  ;;  %v948_v8 = vpop.f32.mrf.mxu1 }
 0x1c9   :  { %1379 = vst [vmem:[%s2821_s5 + $0x40] sm:$0xff] %v1251_v3  ;;  %v1252_v9 = vmax.f32 %v947_v4, 0.0  ;;  %v949_v10 = vadd.f32 %v948_v8, %v2215_v13  ;;  %v655_v11 = vpop.f32.mrf.mxu0 }
 0x1ca   :  { %v777_v12 = vpack.c.bf16 %v741_v7, %v740_v6  ;;  %v950_v14 = vpop.f32.mrf.mxu1  ;;  %v656_v19 = vadd.f32 %v2051_v54, %v655_v11 }
 0x1cb   :  { %1380 = vst.msk [vmem:[%s2821_s5 + $0x48] sm:$0xff] %vm300_vm0, %v1252_v9  ;;  %v1253_v15 = vmax.f32 %v949_v10, 0.0  ;;  %v951_v17 = vadd.f32 %v950_v14, %v2217_v16  ;;  %v657_v18 = vpop.f32.mrf.mxu0 }
 0x1cc   :  { %v954_v20 = vpop.f32.mrf.mxu1  ;;  %1193 = vmatmul.mubr.bf16.gmra.mxu1 %v777_v12  ;;  %v742_v29 = vmax.f32 %v656_v19, 0.0 }
 0x1cd   :  { %1381 = vst [vmem:[%s2821_s5 + $0x50] sm:$0xff] %v1253_v15  ;;  %v1254_v21 = vmax.f32 %v951_v17, 0.0  ;;  %v955_v22 = vadd.f32 %v954_v20, %v2215_v13  ;;  %v658_v23 = vpop.f32.mrf.mxu0  ;;  %1202 = vmatprep.mubr.bf16.mxu1 %v1597_v0 }
 0x1ce   :  { %v659_v24 = vadd.f32 %v2051_v54, %v658_v23  ;;  %v956_v25 = vpop.f32.mrf.mxu1 }
 0x1cf   :  { %1382 = vst.msk [vmem:[%s2821_s5 + $0x58] sm:$0xff] %vm300_vm0, %v1254_v21  ;;  %v1255_v26 = vmax.f32 %v955_v22, 0.0  ;;  %v957_v27 = vadd.f32 %v956_v25, %v2217_v16  ;;  %v660_v28 = vpop.f32.mrf.mxu0 }
 0x1d0   :  { %v743_v30 = vmax.f32 %v659_v24, 0.0  ;;  %v958_v31 = vpop.f32.mrf.mxu1 }
 0x1d1   :  { %1383 = vst [vmem:[%s2821_s5 + $0x60] sm:$0xff] %v1255_v26  ;;  %v1256_v32 = vmax.f32 %v957_v27, 0.0  ;;  %v959_v33 = vadd.f32 %v958_v31, %v2215_v13  ;;  %v663_v34 = vpop.f32.mrf.mxu0 }
 0x1d2   :  { %v778_v35 = vpack.c.bf16 %v743_v30, %v742_v29  ;;  %v960_v36 = vpop.f32.mrf.mxu1  ;;  %v664_v40 = vadd.f32 %v2051_v54, %v663_v34 }
 0x1d3   :  { %1384 = vst.msk [vmem:[%s2821_s5 + $0x68] sm:$0xff] %vm300_vm0, %v1256_v32  ;;  %v1257_v37 = vmax.f32 %v959_v33, 0.0  ;;  %v961_v38 = vadd.f32 %v960_v36, %v2217_v16  ;;  %v665_v39 = vpop.f32.mrf.mxu0 }
 0x1d4   :  { %v964_v41 = vpop.f32.mrf.mxu1  ;;  %1203 = vmatmul.mubr.bf16.gmra.mxu1 %v778_v35  ;;  %v744_v50 = vmax.f32 %v664_v40, 0.0 }
 0x1d5   :  { %1385 = vst [vmem:[%s2821_s5 + $0x70] sm:$0xff] %v1257_v37  ;;  %v1258_v42 = vmax.f32 %v961_v38, 0.0  ;;  %v965_v43 = vadd.f32 %v964_v41, %v2215_v13  ;;  %v666_v44 = vpop.f32.mrf.mxu0  ;;  %1212 = vmatprep.mubr.bf16.mxu1 %v1597_v0 }
 0x1d6   :  { %v667_v45 = vadd.f32 %v2051_v54, %v666_v44  ;;  %v966_v46 = vpop.f32.mrf.mxu1 }
 0x1d7   :  { %1386 = vst.msk [vmem:[%s2821_s5 + $0x78] sm:$0xff] %vm300_vm0, %v1258_v42  ;;  %v1259_v47 = vmax.f32 %v965_v43, 0.0  ;;  %v967_v48 = vadd.f32 %v966_v46, %v2217_v16  ;;  %v668_v49 = vpop.f32.mrf.mxu0 }
 0x1d8   :  { %v745_v51 = vmax.f32 %v667_v45, 0.0  ;;  %v968_v52 = vpop.f32.mrf.mxu1 }
 0x1d9   :  { %1387 = vst [vmem:[%s2821_s5 + $0x80] sm:$0xff] %v1259_v47  ;;  %v1260_v53 = vmax.f32 %v967_v48, 0.0  ;;  %v969_v55 = vadd.f32 %v968_v52, %v2215_v13  ;;  %v671_v56 = vpop.f32.mrf.mxu0 }
 0x1da   :  { %v779_v57 = vpack.c.bf16 %v745_v51, %v744_v50  ;;  %v970_v58 = vpop.f32.mrf.mxu1  ;;  %v672_v62 = vadd.f32 %v2051_v54, %v671_v56 }
 0x1db   :  { %1388 = vst.msk [vmem:[%s2821_s5 + $0x88] sm:$0xff] %vm300_vm0, %v1260_v53  ;;  %v1261_v59 = vmax.f32 %v969_v55, 0.0  ;;  %v971_v60 = vadd.f32 %v970_v58, %v2217_v16  ;;  %v673_v61 = vpop.f32.mrf.mxu0 }
 0x1dc   :  { %v974_v63 = vpop.f32.mrf.mxu1  ;;  %1213 = vmatmul.mubr.bf16.gmra.mxu1 %v779_v57  ;;  %v746_v9 = vmax.f32 %v672_v62, 0.0 }
 0x1dd   :  { %1389 = vst [vmem:[%s2821_s5 + $0x90] sm:$0xff] %v1261_v59  ;;  %v1262_v1 = vmax.f32 %v971_v60, 0.0  ;;  %v975_v2 = vadd.f32 %v974_v63, %v2215_v13  ;;  %v674_v3 = vpop.f32.mrf.mxu0  ;;  %1222 = vmatprep.mubr.bf16.mxu1 %v1597_v0 }
 0x1de   :  { %v675_v4 = vadd.f32 %v2051_v54, %v674_v3  ;;  %v976_v5 = vpop.f32.mrf.mxu1 }
 0x1df   :  { %1390 = vst.msk [vmem:[%s2821_s5 + $0x98] sm:$0xff] %vm300_vm0, %v1262_v1  ;;  %v1263_v6 = vmax.f32 %v975_v2, 0.0  ;;  %v977_v7 = vadd.f32 %v976_v5, %v2217_v16  ;;  %v676_v8 = vpop.f32.mrf.mxu0 }
 0x1e0   :  { %v747_v10 = vmax.f32 %v675_v4, 0.0  ;;  %v978_v11 = vpop.f32.mrf.mxu1 }
 0x1e1   :  { %1391 = vst [vmem:[%s2821_s5 + $0xa0] sm:$0xff] %v1263_v6  ;;  %v1264_v12 = vmax.f32 %v977_v7, 0.0  ;;  %v979_v14 = vadd.f32 %v978_v11, %v2215_v13  ;;  %v679_v15 = vpop.f32.mrf.mxu0 }
 0x1e2   :  { %v780_v17 = vpack.c.bf16 %v747_v10, %v746_v9  ;;  %v980_v18 = vpop.f32.mrf.mxu1  ;;  %v680_v22 = vadd.f32 %v2051_v54, %v679_v15 }
 0x1e3   :  { %1392 = vst.msk [vmem:[%s2821_s5 + $0xa8] sm:$0xff] %vm300_vm0, %v1264_v12  ;;  %v1265_v19 = vmax.f32 %v979_v14, 0.0  ;;  %v981_v20 = vadd.f32 %v980_v18, %v2217_v16  ;;  %v681_v21 = vpop.f32.mrf.mxu0 }
 0x1e4   :  { %v984_v23 = vpop.f32.mrf.mxu1  ;;  %1223 = vmatmul.mubr.bf16.gmra.mxu1 %v780_v17  ;;  %v748_v32 = vmax.f32 %v680_v22, 0.0 }
 0x1e5   :  { %1393 = vst [vmem:[%s2821_s5 + $0xb0] sm:$0xff] %v1265_v19  ;;  %v1266_v24 = vmax.f32 %v981_v20, 0.0  ;;  %v985_v25 = vadd.f32 %v984_v23, %v2215_v13  ;;  %v682_v26 = vpop.f32.mrf.mxu0  ;;  %1232 = vmatprep.mubr.bf16.mxu1 %v1597_v0 }
 0x1e6   :  { %v683_v27 = vadd.f32 %v2051_v54, %v682_v26  ;;  %v986_v28 = vpop.f32.mrf.mxu1 }
 0x1e7   :  { %1394 = vst.msk [vmem:[%s2821_s5 + $0xb8] sm:$0xff] %vm300_vm0, %v1266_v24  ;;  %v1267_v29 = vmax.f32 %v985_v25, 0.0  ;;  %v987_v30 = vadd.f32 %v986_v28, %v2217_v16  ;;  %v684_v31 = vpop.f32.mrf.mxu0 }
 0x1e8   :  { %v749_v33 = vmax.f32 %v683_v27, 0.0  ;;  %v988_v34 = vpop.f32.mrf.mxu1 }
 0x1e9   :  { %1395 = vst [vmem:[%s2821_s5 + $0xc0] sm:$0xff] %v1267_v29  ;;  %v1268_v0 = vmax.f32 %v987_v30, 0.0  ;;  %v989_v54 = vadd.f32 %v988_v34, %v2215_v13 }
 0x1ea   :  { %v781_v35 = vpack.c.bf16 %v749_v33, %v748_v32  ;;  %v990_v36 = vpop.f32.mrf.mxu1 }
 0x1eb   :  { %1396 = vst.msk [vmem:[%s2821_s5 + $0xc8] sm:$0xff] %vm300_vm0, %v1268_v0  ;;  %v1269_v37 = vmax.f32 %v989_v54, 0.0  ;;  %v991_v38 = vadd.f32 %v990_v36, %v2217_v16 }
 0x1ec   :  { %v994_v39 = vpop.f32.mrf.mxu1  ;;  %1233 = vmatmul.mubr.bf16.gmra.mxu1 %v781_v35 }
 0x1ed   :  { %1397 = vst [vmem:[%s2821_s5 + $0xd0] sm:$0xff] %v1269_v37  ;;  %v1270_v40 = vmax.f32 %v991_v38, 0.0  ;;  %v995_v41 = vadd.f32 %v994_v39, %v2215_v13 }
 0x1ee   :  { %v996_v42 = vpop.f32.mrf.mxu1 }
 0x1ef   :  { %1398 = vst.msk [vmem:[%s2821_s5 + $0xd8] sm:$0xff] %vm300_vm0, %v1270_v40  ;;  %v1271_v43 = vmax.f32 %v995_v41, 0.0  ;;  %v997_v44 = vadd.f32 %v996_v42, %v2217_v16 }
 0x1f0   :  { %v998_v45 = vpop.f32.mrf.mxu1 }
 0x1f1   :  { %1399 = vst [vmem:[%s2821_s5 + $0xe0] sm:$0xff] %v1271_v43  ;;  %v1272_v46 = vmax.f32 %v997_v44, 0.0  ;;  %v999_v47 = vadd.f32 %v998_v45, %v2215_v13 }
 0x1f2   :  { %v1000_v48 = vpop.f32.mrf.mxu1 }
 0x1f3   :  { %1400 = vst.msk [vmem:[%s2821_s5 + $0xe8] sm:$0xff] %vm300_vm0, %v1272_v46  ;;  %v1273_v49 = vmax.f32 %v999_v47, 0.0  ;;  %v1001_v50 = vadd.f32 %v1000_v48, %v2217_v16 }
 0x1f4   :  { %v1004_v51 = vpop.f32.mrf.mxu1 }
 0x1f5   :  { %1401 = vst [vmem:[%s2821_s5 + $0xf0] sm:$0xff] %v1273_v49  ;;  %v1274_v52 = vmax.f32 %v1001_v50, 0.0  ;;  %v1005_v53 = vadd.f32 %v1004_v51, %v2215_v13 }
 0x1f6   :  { %v1006_v55 = vpop.f32.mrf.mxu1 }
 0x1f7   :  { %1402 = vst.msk [vmem:[%s2821_s5 + $0xf8] sm:$0xff] %vm300_vm0, %v1274_v52  ;;  %v1275_v56 = vmax.f32 %v1005_v53, 0.0  ;;  %v1007_v57 = vadd.f32 %v1006_v55, %v2217_v16 }
 0x1f8   :  { %v1008_v58 = vpop.f32.mrf.mxu1 }
 0x1f9   :  { %1403 = vst [vmem:[%s2821_s5 + $0x100] sm:$0xff] %v1275_v56  ;;  %v1276_v59 = vmax.f32 %v1007_v57, 0.0  ;;  %v1009_v60 = vadd.f32 %v1008_v58, %v2215_v13 }
 0x1fa   :  { %v1010_v61 = vpop.f32.mrf.mxu1 }
 0x1fb   :  { %1404 = vst.msk [vmem:[%s2821_s5 + $0x108] sm:$0xff] %vm300_vm0, %v1276_v59  ;;  %v1277_v62 = vmax.f32 %v1009_v60, 0.0  ;;  %v1011_v63 = vadd.f32 %v1010_v61, %v2217_v16 }
 0x1fc   :  { %v1014_v1 = vpop.f32.mrf.mxu1 }
 0x1fd   :  { %1405 = vst [vmem:[%s2821_s5 + $0x110] sm:$0xff] %v1277_v62  ;;  %v1278_v2 = vmax.f32 %v1011_v63, 0.0  ;;  %v1015_v3 = vadd.f32 %v1014_v1, %v2215_v13 }
 0x1fe   :  { %v1016_v4 = vpop.f32.mrf.mxu1 }
 0x1ff   :  { %1406 = vst.msk [vmem:[%s2821_s5 + $0x118] sm:$0xff] %vm300_vm0, %v1278_v2  ;;  %v1279_v5 = vmax.f32 %v1015_v3, 0.0  ;;  %v1017_v6 = vadd.f32 %v1016_v4, %v2217_v16 }
 0x200   :  { %v1018_v7 = vpop.f32.mrf.mxu1 }
 0x201   :  { %1407 = vst [vmem:[%s2821_s5 + $0x120] sm:$0xff] %v1279_v5  ;;  %v1280_v8 = vmax.f32 %v1017_v6, 0.0  ;;  %v1019_v9 = vadd.f32 %v1018_v7, %v2215_v13 }
 0x202   :  { %v1020_v10 = vpop.f32.mrf.mxu1 }
 0x203   :  { %1408 = vst.msk [vmem:[%s2821_s5 + $0x128] sm:$0xff] %vm300_vm0, %v1280_v8  ;;  %v1281_v11 = vmax.f32 %v1019_v9, 0.0  ;;  %v1021_v12 = vadd.f32 %v1020_v10, %v2217_v16 }
 0x204   :  { %v1024_v14 = vpop.f32.mrf.mxu1 }
 0x205   :  { %1409 = vst [vmem:[%s2821_s5 + $0x130] sm:$0xff] %v1281_v11  ;;  %v1282_v15 = vmax.f32 %v1021_v12, 0.0  ;;  %v1025_v17 = vadd.f32 %v1024_v14, %v2215_v13 }
 0x206   :  { %v1026_v18 = vpop.f32.mrf.mxu1 }
 0x207   :  { %1410 = vst.msk [vmem:[%s2821_s5 + $0x138] sm:$0xff] %vm300_vm0, %v1282_v15  ;;  %v1283_v19 = vmax.f32 %v1025_v17, 0.0  ;;  %v1027_v20 = vadd.f32 %v1026_v18, %v2217_v16 }
 0x208   :  { %v1028_v21 = vpop.f32.mrf.mxu1 }
 0x209   :  { %1411 = vst [vmem:[%s2821_s5 + $0x140] sm:$0xff] %v1283_v19  ;;  %v1284_v22 = vmax.f32 %v1027_v20, 0.0  ;;  %v1029_v23 = vadd.f32 %v1028_v21, %v2215_v13 }
 0x20a   :  { %v1030_v24 = vpop.f32.mrf.mxu1 }
 0x20b   :  { %1412 = vst.msk [vmem:[%s2821_s5 + $0x148] sm:$0xff] %vm300_vm0, %v1284_v22  ;;  %v1285_v25 = vmax.f32 %v1029_v23, 0.0  ;;  %v1031_v26 = vadd.f32 %v1030_v24, %v2217_v16 }
 0x20c   :  { %v1034_v27 = vpop.f32.mrf.mxu1 }
 0x20d   :  { %1413 = vst [vmem:[%s2821_s5 + $0x150] sm:$0xff] %v1285_v25  ;;  %v1286_v28 = vmax.f32 %v1031_v26, 0.0  ;;  %v1035_v29 = vadd.f32 %v1034_v27, %v2215_v13 }
 0x20e   :  { %v1036_v30 = vpop.f32.mrf.mxu1 }
 0x20f   :  { %1414 = vst.msk [vmem:[%s2821_s5 + $0x158] sm:$0xff] %vm300_vm0, %v1286_v28  ;;  %v1287_v31 = vmax.f32 %v1035_v29, 0.0  ;;  %v1037_v32 = vadd.f32 %v1036_v30, %v2217_v16 }
 0x210   :  { %v1038_v33 = vpop.f32.mrf.mxu1 }
 0x211   :  { %1415 = vst [vmem:[%s2821_s5 + $0x160] sm:$0xff] %v1287_v31  ;;  %v1288_v34 = vmax.f32 %v1037_v32, 0.0  ;;  %v1039_v0 = vadd.f32 %v1038_v33, %v2215_v13 }
 0x212   :  { %v1040_v54 = vpop.f32.mrf.mxu1 }
 0x213   :  { %1416 = vst.msk [vmem:[%s2821_s5 + $0x168] sm:$0xff] %vm300_vm0, %v1288_v34  ;;  %v1289_v35 = vmax.f32 %v1039_v0, 0.0  ;;  %v1041_v36 = vadd.f32 %v1040_v54, %v2217_v16 }
 0x214   :  { %v1044_v37 = vpop.f32.mrf.mxu1 }
 0x215   :  { %1417 = vst [vmem:[%s2821_s5 + $0x170] sm:$0xff] %v1289_v35  ;;  %v1290_v38 = vmax.f32 %v1041_v36, 0.0  ;;  %v1045_v39 = vadd.f32 %v1044_v37, %v2215_v13 }
 0x216   :  { %v1046_v40 = vpop.f32.mrf.mxu1 }
 0x217   :  { %1418 = vst.msk [vmem:[%s2821_s5 + $0x178] sm:$0xff] %vm300_vm0, %v1290_v38  ;;  %v1291_v41 = vmax.f32 %v1045_v39, 0.0  ;;  %v1047_v42 = vadd.f32 %v1046_v40, %v2217_v16 }
 0x218   :  { %v1048_v43 = vpop.f32.mrf.mxu1 }
 0x219   :  { %1419 = vst [vmem:[%s2821_s5 + $0x180] sm:$0xff] %v1291_v41  ;;  %v1292_v44 = vmax.f32 %v1047_v42, 0.0  ;;  %v1049_v45 = vadd.f32 %v1048_v43, %v2215_v13 }
 0x21a   :  { %v1050_v46 = vpop.f32.mrf.mxu1 }
 0x21b   :  { %1420 = vst.msk [vmem:[%s2821_s5 + $0x188] sm:$0xff] %vm300_vm0, %v1292_v44  ;;  %v1293_v47 = vmax.f32 %v1049_v45, 0.0  ;;  %v1051_v48 = vadd.f32 %v1050_v46, %v2217_v16 }
 0x21c   :  { %v1054_v49 = vpop.f32.mrf.mxu1 }
 0x21d   :  { %1421 = vst [vmem:[%s2821_s5 + $0x190] sm:$0xff] %v1293_v47  ;;  %v1294_v50 = vmax.f32 %v1051_v48, 0.0  ;;  %v1055_v51 = vadd.f32 %v1054_v49, %v2215_v13 }
 0x21e   :  { %v1056_v52 = vpop.f32.mrf.mxu1 }
 0x21f   :  { %1422 = vst.msk [vmem:[%s2821_s5 + $0x198] sm:$0xff] %vm300_vm0, %v1294_v50  ;;  %v1295_v53 = vmax.f32 %v1055_v51, 0.0  ;;  %v1057_v55 = vadd.f32 %v1056_v52, %v2217_v16 }
 0x220   :  { %v1058_v56 = vpop.f32.mrf.mxu1 }
 0x221   :  { %1423 = vst [vmem:[%s2821_s5 + $0x1a0] sm:$0xff] %v1295_v53  ;;  %v1296_v57 = vmax.f32 %v1057_v55, 0.0  ;;  %v1059_v58 = vadd.f32 %v1058_v56, %v2215_v13 }
 0x222   :  { %v1060_v59 = vpop.f32.mrf.mxu1 }
 0x223   :  { %1424 = vst.msk [vmem:[%s2821_s5 + $0x1a8] sm:$0xff] %vm300_vm0, %v1296_v57  ;;  %v1297_v60 = vmax.f32 %v1059_v58, 0.0  ;;  %v1061_v61 = vadd.f32 %v1060_v59, %v2217_v16 }
 0x224   :  { %v1064_v62 = vpop.f32.mrf.mxu1 }
 0x225   :  { %1425 = vst [vmem:[%s2821_s5 + $0x1b0] sm:$0xff] %v1297_v60  ;;  %v1298_v63 = vmax.f32 %v1061_v61, 0.0  ;;  %v1065_v1 = vadd.f32 %v1064_v62, %v2215_v13 }
 0x226   :  { %v1066_v2 = vpop.f32.mrf.mxu1 }
 0x227   :  { %1426 = vst.msk [vmem:[%s2821_s5 + $0x1b8] sm:$0xff] %vm300_vm0, %v1298_v63  ;;  %v1299_v3 = vmax.f32 %v1065_v1, 0.0  ;;  %v1067_v4 = vadd.f32 %v1066_v2, %v2217_v16 }
 0x228   :  { %v1068_v5 = vpop.f32.mrf.mxu1 }
 0x229   :  { %1427 = vst [vmem:[%s2821_s5 + $0x1c0] sm:$0xff] %v1299_v3  ;;  %v1300_v6 = vmax.f32 %v1067_v4, 0.0  ;;  %v1069_v7 = vadd.f32 %v1068_v5, %v2215_v13 }
 0x22a   :  { %v1070_v8 = vpop.f32.mrf.mxu1 }
 0x22b   :  { %1428 = vst.msk [vmem:[%s2821_s5 + $0x1c8] sm:$0xff] %vm300_vm0, %v1300_v6  ;;  %v1301_v9 = vmax.f32 %v1069_v7, 0.0  ;;  %v1071_v10 = vadd.f32 %v1070_v8, %v2217_v16 }
 0x22c   :  { %v1074_v11 = vpop.f32.mrf.mxu1 }
 0x22d   :  { %1429 = vst [vmem:[%s2821_s5 + $0x1d0] sm:$0xff] %v1301_v9  ;;  %v1302_v12 = vmax.f32 %v1071_v10, 0.0  ;;  %v1075_v14 = vadd.f32 %v1074_v11, %v2215_v13 }
 0x22e   :  { %v1076_v15 = vpop.f32.mrf.mxu1 }
 0x22f   :  { %1430 = vst.msk [vmem:[%s2821_s5 + $0x1d8] sm:$0xff] %vm300_vm0, %v1302_v12  ;;  %v1303_v17 = vmax.f32 %v1075_v14, 0.0  ;;  %v1077_v18 = vadd.f32 %v1076_v15, %v2217_v16 }
 0x230   :  { %v1078_v19 = vpop.f32.mrf.mxu1 }
 0x231   :  { %1431 = vst [vmem:[%s2821_s5 + $0x1e0] sm:$0xff] %v1303_v17  ;;  %v1304_v20 = vmax.f32 %v1077_v18, 0.0  ;;  %v1079_v21 = vadd.f32 %v1078_v19, %v2215_v13 }
 0x232   :  { %v1080_v22 = vpop.f32.mrf.mxu1 }
 0x233   :  { %1432 = vst.msk [vmem:[%s2821_s5 + $0x1e8] sm:$0xff] %vm300_vm0, %v1304_v20  ;;  %v1305_v23 = vmax.f32 %v1079_v21, 0.0  ;;  %v1081_v24 = vadd.f32 %v1080_v22, %v2217_v16 }
 0x234   :  { %v1084_v25 = vpop.f32.mrf.mxu1 }
 0x235   :  { %1433 = vst [vmem:[%s2821_s5 + $0x1f0] sm:$0xff] %v1305_v23  ;;  %v1306_v26 = vmax.f32 %v1081_v24, 0.0  ;;  %v1085_v27 = vadd.f32 %v1084_v25, %v2215_v13 }
 0x236   :  { %v1086_v28 = vpop.f32.mrf.mxu1 }
 0x237   :  { %1434 = vst.msk [vmem:[%s2821_s5 + $0x1f8] sm:$0xff] %vm300_vm0, %v1306_v26  ;;  %v1307_v29 = vmax.f32 %v1085_v27, 0.0  ;;  %v1087_v30 = vadd.f32 %v1086_v28, %v2217_v16 }
 0x238   :  { %v1088_v31 = vpop.f32.mrf.mxu1 }
 0x239   :  { %1435 = vst [vmem:[%s2821_s5 + $0x200] sm:$0xff] %v1307_v29  ;;  %v1308_v32 = vmax.f32 %v1087_v30, 0.0  ;;  %v1089_v33 = vadd.f32 %v1088_v31, %v2215_v13 }
 0x23a   :  { %v1090_v34 = vpop.f32.mrf.mxu1 }
 0x23b   :  { %1436 = vst.msk [vmem:[%s2821_s5 + $0x208] sm:$0xff] %vm300_vm0, %v1308_v32  ;;  %v1309_v0 = vmax.f32 %v1089_v33, 0.0  ;;  %v1091_v54 = vadd.f32 %v1090_v34, %v2217_v16 }
 0x23c   :  { %v1094_v35 = vpop.f32.mrf.mxu1 }
 0x23d   :  { %1437 = vst [vmem:[%s2821_s5 + $0x210] sm:$0xff] %v1309_v0  ;;  %v1310_v36 = vmax.f32 %v1091_v54, 0.0  ;;  %v1095_v37 = vadd.f32 %v1094_v35, %v2215_v13 }
 0x23e   :  { %v1096_v38 = vpop.f32.mrf.mxu1 }
 0x23f   :  { %1438 = vst.msk [vmem:[%s2821_s5 + $0x218] sm:$0xff] %vm300_vm0, %v1310_v36  ;;  %v1311_v39 = vmax.f32 %v1095_v37, 0.0  ;;  %v1097_v40 = vadd.f32 %v1096_v38, %v2217_v16 }
 0x240   :  { %v1098_v41 = vpop.f32.mrf.mxu1 }
 0x241   :  { %1439 = vst [vmem:[%s2821_s5 + $0x220] sm:$0xff] %v1311_v39  ;;  %v1312_v42 = vmax.f32 %v1097_v40, 0.0  ;;  %v1099_v43 = vadd.f32 %v1098_v41, %v2215_v13 }
 0x242   :  { %v1100_v44 = vpop.f32.mrf.mxu1 }
 0x243   :  { %1440 = vst.msk [vmem:[%s2821_s5 + $0x228] sm:$0xff] %vm300_vm0, %v1312_v42  ;;  %v1313_v45 = vmax.f32 %v1099_v43, 0.0  ;;  %v1101_v46 = vadd.f32 %v1100_v44, %v2217_v16 }
 0x244   :  { %v1104_v47 = vpop.f32.mrf.mxu1 }
 0x245   :  { %1441 = vst [vmem:[%s2821_s5 + $0x230] sm:$0xff] %v1313_v45  ;;  %v1314_v48 = vmax.f32 %v1101_v46, 0.0  ;;  %v1105_v49 = vadd.f32 %v1104_v47, %v2215_v13 }
 0x246   :  { %v1106_v50 = vpop.f32.mrf.mxu1 }
 0x247   :  { %1442 = vst.msk [vmem:[%s2821_s5 + $0x238] sm:$0xff] %vm300_vm0, %v1314_v48  ;;  %v1315_v51 = vmax.f32 %v1105_v49, 0.0  ;;  %v1107_v52 = vadd.f32 %v1106_v50, %v2217_v16 }
 0x248   :  { %v1108_v53 = vpop.f32.mrf.mxu1 }
 0x249   :  { %1443 = vst [vmem:[%s2821_s5 + $0x240] sm:$0xff] %v1315_v51  ;;  %v1316_v55 = vmax.f32 %v1107_v52, 0.0  ;;  %v1109_v56 = vadd.f32 %v1108_v53, %v2215_v13 }
 0x24a   :  { %v1110_v57 = vpop.f32.mrf.mxu1 }
 0x24b   :  { %1444 = vst.msk [vmem:[%s2821_s5 + $0x248] sm:$0xff] %vm300_vm0, %v1316_v55  ;;  %v1317_v58 = vmax.f32 %v1109_v56, 0.0  ;;  %v1111_v59 = vadd.f32 %v1110_v57, %v2217_v16 }
 0x24c   :  { %v1114_v60 = vpop.f32.mrf.mxu1 }
 0x24d   :  { %1445 = vst [vmem:[%s2821_s5 + $0x250] sm:$0xff] %v1317_v58  ;;  %v1318_v61 = vmax.f32 %v1111_v59, 0.0  ;;  %v1115_v62 = vadd.f32 %v1114_v60, %v2215_v13 }
 0x24e   :  { %v1116_v63 = vpop.f32.mrf.mxu1 }
 0x24f   :  { %1446 = vst.msk [vmem:[%s2821_s5 + $0x258] sm:$0xff] %vm300_vm0, %v1318_v61  ;;  %v1319_v1 = vmax.f32 %v1115_v62, 0.0  ;;  %v1117_v2 = vadd.f32 %v1116_v63, %v2217_v16 }
 0x250   :  { %v1118_v3 = vpop.f32.mrf.mxu1 }
 0x251   :  { %1447 = vst [vmem:[%s2821_s5 + $0x260] sm:$0xff] %v1319_v1  ;;  %v1320_v4 = vmax.f32 %v1117_v2, 0.0  ;;  %v1119_v5 = vadd.f32 %v1118_v3, %v2215_v13 }
 0x252   :  { %v1120_v6 = vpop.f32.mrf.mxu1 }
 0x253   :  { %1448 = vst.msk [vmem:[%s2821_s5 + $0x268] sm:$0xff] %vm300_vm0, %v1320_v4  ;;  %v1321_v7 = vmax.f32 %v1119_v5, 0.0  ;;  %v1121_v8 = vadd.f32 %v1120_v6, %v2217_v16 }
 0x254   :  { %v1124_v9 = vpop.f32.mrf.mxu1 }
 0x255   :  { %1449 = vst [vmem:[%s2821_s5 + $0x270] sm:$0xff] %v1321_v7  ;;  %v1322_v10 = vmax.f32 %v1121_v8, 0.0  ;;  %v1125_v11 = vadd.f32 %v1124_v9, %v2215_v13 }
 0x256   :  { %v1126_v12 = vpop.f32.mrf.mxu1 }
 0x257   :  { %1450 = vst.msk [vmem:[%s2821_s5 + $0x278] sm:$0xff] %vm300_vm0, %v1322_v10  ;;  %v1323_v14 = vmax.f32 %v1125_v11, 0.0  ;;  %v1127_v15 = vadd.f32 %v1126_v12, %v2217_v16 }
 0x258   :  { %v1128_v17 = vpop.f32.mrf.mxu1 }
 0x259   :  { %1451 = vst [vmem:[%s2821_s5 + $0x280] sm:$0xff] %v1323_v14  ;;  %v1324_v18 = vmax.f32 %v1127_v15, 0.0  ;;  %v1129_v19 = vadd.f32 %v1128_v17, %v2215_v13 }
 0x25a   :  { %v1130_v20 = vpop.f32.mrf.mxu1 }
 0x25b   :  { %1452 = vst.msk [vmem:[%s2821_s5 + $0x288] sm:$0xff] %vm300_vm0, %v1324_v18  ;;  %v1325_v21 = vmax.f32 %v1129_v19, 0.0  ;;  %v1131_v22 = vadd.f32 %v1130_v20, %v2217_v16 }
 0x25c   :  { %v1134_v23 = vpop.f32.mrf.mxu1 }
 0x25d   :  { %1453 = vst [vmem:[%s2821_s5 + $0x290] sm:$0xff] %v1325_v21  ;;  %v1326_v24 = vmax.f32 %v1131_v22, 0.0  ;;  %v1135_v25 = vadd.f32 %v1134_v23, %v2215_v13 }
 0x25e   :  { %v1136_v26 = vpop.f32.mrf.mxu1 }
 0x25f   :  { %1454 = vst.msk [vmem:[%s2821_s5 + $0x298] sm:$0xff] %vm300_vm0, %v1326_v24  ;;  %v1327_v27 = vmax.f32 %v1135_v25, 0.0  ;;  %v1137_v28 = vadd.f32 %v1136_v26, %v2217_v16 }
 0x260   :  { %v1138_v29 = vpop.f32.mrf.mxu1 }
 0x261   :  { %1455 = vst [vmem:[%s2821_s5 + $0x2a0] sm:$0xff] %v1327_v27  ;;  %v1328_v30 = vmax.f32 %v1137_v28, 0.0  ;;  %v1139_v31 = vadd.f32 %v1138_v29, %v2215_v13 }
 0x262   :  { %v1140_v32 = vpop.f32.mrf.mxu1 }
 0x263   :  { %1456 = vst.msk [vmem:[%s2821_s5 + $0x2a8] sm:$0xff] %vm300_vm0, %v1328_v30  ;;  %v1329_v33 = vmax.f32 %v1139_v31, 0.0  ;;  %v1141_v34 = vadd.f32 %v1140_v32, %v2217_v16 }
 0x264   :  { %v1144_v0 = vpop.f32.mrf.mxu1 }
 0x265   :  { %1457 = vst [vmem:[%s2821_s5 + $0x2b0] sm:$0xff] %v1329_v33  ;;  %v1330_v54 = vmax.f32 %v1141_v34, 0.0  ;;  %v1145_v35 = vadd.f32 %v1144_v0, %v2215_v13 }
 0x266   :  { %v1146_v36 = vpop.f32.mrf.mxu1 }
 0x267   :  { %1458 = vst.msk [vmem:[%s2821_s5 + $0x2b8] sm:$0xff] %vm300_vm0, %v1330_v54  ;;  %v1331_v37 = vmax.f32 %v1145_v35, 0.0  ;;  %v1147_v38 = vadd.f32 %v1146_v36, %v2217_v16 }
 0x268   :  { %v1148_v39 = vpop.f32.mrf.mxu1 }
 0x269   :  { %1459 = vst [vmem:[%s2821_s5 + $0x2c0] sm:$0xff] %v1331_v37  ;;  %v1332_v40 = vmax.f32 %v1147_v38, 0.0  ;;  %v1149_v41 = vadd.f32 %v1148_v39, %v2215_v13 }
 0x26a   :  { %v1150_v42 = vpop.f32.mrf.mxu1 }
 0x26b   :  { %1460 = vst.msk [vmem:[%s2821_s5 + $0x2c8] sm:$0xff] %vm300_vm0, %v1332_v40  ;;  %v1333_v43 = vmax.f32 %v1149_v41, 0.0  ;;  %v1151_v44 = vadd.f32 %v1150_v42, %v2217_v16 }
 0x26c   :  { %v1154_v45 = vpop.f32.mrf.mxu1 }
 0x26d   :  { %1461 = vst [vmem:[%s2821_s5 + $0x2d0] sm:$0xff] %v1333_v43  ;;  %v1334_v46 = vmax.f32 %v1151_v44, 0.0  ;;  %v1155_v47 = vadd.f32 %v1154_v45, %v2215_v13 }
 0x26e   :  { %v1156_v48 = vpop.f32.mrf.mxu1 }
 0x26f   :  { %1462 = vst.msk [vmem:[%s2821_s5 + $0x2d8] sm:$0xff] %vm300_vm0, %v1334_v46  ;;  %v1335_v49 = vmax.f32 %v1155_v47, 0.0  ;;  %v1157_v50 = vadd.f32 %v1156_v48, %v2217_v16 }
 0x270   :  { %v1158_v51 = vpop.f32.mrf.mxu1 }
 0x271   :  { %1463 = vst [vmem:[%s2821_s5 + $0x2e0] sm:$0xff] %v1335_v49  ;;  %v1336_v52 = vmax.f32 %v1157_v50, 0.0  ;;  %v1159_v53 = vadd.f32 %v1158_v51, %v2215_v13 }
 0x272   :  { %v1160_v55 = vpop.f32.mrf.mxu1 }
 0x273   :  { %1464 = vst.msk [vmem:[%s2821_s5 + $0x2e8] sm:$0xff] %vm300_vm0, %v1336_v52  ;;  %v1337_v56 = vmax.f32 %v1159_v53, 0.0  ;;  %v1161_v57 = vadd.f32 %v1160_v55, %v2217_v16 }
 0x274   :  { %v1164_v58 = vpop.f32.mrf.mxu1 }
 0x275   :  { %1465 = vst [vmem:[%s2821_s5 + $0x2f0] sm:$0xff] %v1337_v56  ;;  %v1338_v59 = vmax.f32 %v1161_v57, 0.0  ;;  %v1165_v60 = vadd.f32 %v1164_v58, %v2215_v13 }
 0x276   :  { %v1166_v61 = vpop.f32.mrf.mxu1 }
 0x277   :  { %1466 = vst.msk [vmem:[%s2821_s5 + $0x2f8] sm:$0xff] %vm300_vm0, %v1338_v59  ;;  %v1339_v62 = vmax.f32 %v1165_v60, 0.0  ;;  %v1167_v63 = vadd.f32 %v1166_v61, %v2217_v16 }
 0x278   :  { %v1168_v1 = vpop.f32.mrf.mxu1 }
 0x279   :  { %1467 = vst [vmem:[%s2821_s5 + $0x300] sm:$0xff] %v1339_v62  ;;  %v1340_v2 = vmax.f32 %v1167_v63, 0.0  ;;  %v1169_v3 = vadd.f32 %v1168_v1, %v2215_v13 }
 0x27a   :  { %v1170_v4 = vpop.f32.mrf.mxu1 }
 0x27b   :  { %1468 = vst.msk [vmem:[%s2821_s5 + $0x308] sm:$0xff] %vm300_vm0, %v1340_v2  ;;  %v1341_v5 = vmax.f32 %v1169_v3, 0.0  ;;  %v1171_v6 = vadd.f32 %v1170_v4, %v2217_v16 }
 0x27c   :  { %v1174_v7 = vpop.f32.mrf.mxu1 }
 0x27d   :  { %1469 = vst [vmem:[%s2821_s5 + $0x310] sm:$0xff] %v1341_v5  ;;  %v1342_v8 = vmax.f32 %v1171_v6, 0.0  ;;  %v1175_v9 = vadd.f32 %v1174_v7, %v2215_v13 }
 0x27e   :  { %v1176_v10 = vpop.f32.mrf.mxu1 }
 0x27f   :  { %1470 = vst.msk [vmem:[%s2821_s5 + $0x318] sm:$0xff] %vm300_vm0, %v1342_v8  ;;  %v1343_v11 = vmax.f32 %v1175_v9, 0.0  ;;  %v1177_v12 = vadd.f32 %v1176_v10, %v2217_v16 }
 0x280   :  { %v1178_v14 = vpop.f32.mrf.mxu1 }
 0x281   :  { %1471 = vst [vmem:[%s2821_s5 + $0x320] sm:$0xff] %v1343_v11  ;;  %v1344_v15 = vmax.f32 %v1177_v12, 0.0  ;;  %v1179_v17 = vadd.f32 %v1178_v14, %v2215_v13 }
 0x282   :  { %v1180_v18 = vpop.f32.mrf.mxu1 }
 0x283   :  { %1472 = vst.msk [vmem:[%s2821_s5 + $0x328] sm:$0xff] %vm300_vm0, %v1344_v15  ;;  %v1345_v19 = vmax.f32 %v1179_v17, 0.0  ;;  %v1181_v20 = vadd.f32 %v1180_v18, %v2217_v16 }
 0x284   :  { %v1184_v21 = vpop.f32.mrf.mxu1 }
 0x285   :  { %1473 = vst [vmem:[%s2821_s5 + $0x330] sm:$0xff] %v1345_v19  ;;  %v1346_v22 = vmax.f32 %v1181_v20, 0.0  ;;  %v1185_v23 = vadd.f32 %v1184_v21, %v2215_v13 }
 0x286   :  { %v1186_v24 = vpop.f32.mrf.mxu1 }
 0x287   :  { %1474 = vst.msk [vmem:[%s2821_s5 + $0x338] sm:$0xff] %vm300_vm0, %v1346_v22  ;;  %v1347_v25 = vmax.f32 %v1185_v23, 0.0  ;;  %v1187_v26 = vadd.f32 %v1186_v24, %v2217_v16 }
 0x288   :  { %v1188_v27 = vpop.f32.mrf.mxu1 }
 0x289   :  { %1475 = vst [vmem:[%s2821_s5 + $0x340] sm:$0xff] %v1347_v25  ;;  %v1348_v28 = vmax.f32 %v1187_v26, 0.0  ;;  %v1189_v29 = vadd.f32 %v1188_v27, %v2215_v13 }
 0x28a   :  { %v1190_v30 = vpop.f32.mrf.mxu1 }
 0x28b   :  { %1476 = vst.msk [vmem:[%s2821_s5 + $0x348] sm:$0xff] %vm300_vm0, %v1348_v28  ;;  %v1349_v31 = vmax.f32 %v1189_v29, 0.0  ;;  %v1191_v32 = vadd.f32 %v1190_v30, %v2217_v16 }
 0x28c   :  { %v1194_v33 = vpop.f32.mrf.mxu1 }
 0x28d   :  { %1477 = vst [vmem:[%s2821_s5 + $0x350] sm:$0xff] %v1349_v31  ;;  %v1350_v34 = vmax.f32 %v1191_v32, 0.0  ;;  %v1195_v0 = vadd.f32 %v1194_v33, %v2215_v13 }
 0x28e   :  { %v1196_v54 = vpop.f32.mrf.mxu1 }
 0x28f   :  { %1478 = vst.msk [vmem:[%s2821_s5 + $0x358] sm:$0xff] %vm300_vm0, %v1350_v34  ;;  %v1351_v35 = vmax.f32 %v1195_v0, 0.0  ;;  %v1197_v36 = vadd.f32 %v1196_v54, %v2217_v16 }
 0x290   :  { %v1198_v37 = vpop.f32.mrf.mxu1 }
 0x291   :  { %1479 = vst [vmem:[%s2821_s5 + $0x360] sm:$0xff] %v1351_v35  ;;  %v1352_v38 = vmax.f32 %v1197_v36, 0.0  ;;  %v1199_v39 = vadd.f32 %v1198_v37, %v2215_v13 }
 0x292   :  { %v1200_v40 = vpop.f32.mrf.mxu1 }
 0x293   :  { %1480 = vst.msk [vmem:[%s2821_s5 + $0x368] sm:$0xff] %vm300_vm0, %v1352_v38  ;;  %v1353_v41 = vmax.f32 %v1199_v39, 0.0  ;;  %v1201_v42 = vadd.f32 %v1200_v40, %v2217_v16 }
 0x294   :  { %v1204_v43 = vpop.f32.mrf.mxu1 }
 0x295   :  { %1481 = vst [vmem:[%s2821_s5 + $0x370] sm:$0xff] %v1353_v41  ;;  %v1354_v44 = vmax.f32 %v1201_v42, 0.0  ;;  %v1205_v45 = vadd.f32 %v1204_v43, %v2215_v13 }
 0x296   :  { %v1206_v46 = vpop.f32.mrf.mxu1 }
 0x297   :  { %1482 = vst.msk [vmem:[%s2821_s5 + $0x378] sm:$0xff] %vm300_vm0, %v1354_v44  ;;  %v1355_v47 = vmax.f32 %v1205_v45, 0.0  ;;  %v1207_v48 = vadd.f32 %v1206_v46, %v2217_v16 }
 0x298   :  { %v1208_v49 = vpop.f32.mrf.mxu1 }
 0x299   :  { %1483 = vst [vmem:[%s2821_s5 + $0x380] sm:$0xff] %v1355_v47  ;;  %v1356_v50 = vmax.f32 %v1207_v48, 0.0  ;;  %v1209_v51 = vadd.f32 %v1208_v49, %v2215_v13 }
 0x29a   :  { %v1210_v52 = vpop.f32.mrf.mxu1 }
 0x29b   :  { %1484 = vst.msk [vmem:[%s2821_s5 + $0x388] sm:$0xff] %vm300_vm0, %v1356_v50  ;;  %v1357_v53 = vmax.f32 %v1209_v51, 0.0  ;;  %v1211_v55 = vadd.f32 %v1210_v52, %v2217_v16 }
 0x29c   :  { %v1214_v56 = vpop.f32.mrf.mxu1 }
 0x29d   :  { %1485 = vst [vmem:[%s2821_s5 + $0x390] sm:$0xff] %v1357_v53  ;;  %v1358_v57 = vmax.f32 %v1211_v55, 0.0  ;;  %v1215_v58 = vadd.f32 %v1214_v56, %v2215_v13 }
 0x29e   :  { %v1216_v59 = vpop.f32.mrf.mxu1 }
 0x29f   :  { %1486 = vst.msk [vmem:[%s2821_s5 + $0x398] sm:$0xff] %vm300_vm0, %v1358_v57  ;;  %v1359_v60 = vmax.f32 %v1215_v58, 0.0  ;;  %v1217_v61 = vadd.f32 %v1216_v59, %v2217_v16 }
 0x2a0   :  { %v1218_v62 = vpop.f32.mrf.mxu1 }
 0x2a1   :  { %1487 = vst [vmem:[%s2821_s5 + $0x3a0] sm:$0xff] %v1359_v60  ;;  %v1360_v63 = vmax.f32 %v1217_v61, 0.0  ;;  %v1219_v1 = vadd.f32 %v1218_v62, %v2215_v13 }
 0x2a2   :  { %v1220_v2 = vpop.f32.mrf.mxu1 }
 0x2a3   :  { %1488 = vst.msk [vmem:[%s2821_s5 + $0x3a8] sm:$0xff] %vm300_vm0, %v1360_v63  ;;  %v1361_v3 = vmax.f32 %v1219_v1, 0.0  ;;  %v1221_v4 = vadd.f32 %v1220_v2, %v2217_v16 }
 0x2a4   :  { %v1224_v5 = vpop.f32.mrf.mxu1 }
 0x2a5   :  { %1489 = vst [vmem:[%s2821_s5 + $0x3b0] sm:$0xff] %v1361_v3  ;;  %v1362_v6 = vmax.f32 %v1221_v4, 0.0  ;;  %v1225_v7 = vadd.f32 %v1224_v5, %v2215_v13 }
 0x2a6   :  { %v1226_v8 = vpop.f32.mrf.mxu1 }
 0x2a7   :  { %1490 = vst.msk [vmem:[%s2821_s5 + $0x3b8] sm:$0xff] %vm300_vm0, %v1362_v6  ;;  %v1363_v9 = vmax.f32 %v1225_v7, 0.0  ;;  %v1227_v10 = vadd.f32 %v1226_v8, %v2217_v16 }
 0x2a8   :  { %v1228_v11 = vpop.f32.mrf.mxu1 }
 0x2a9   :  { %1491 = vst [vmem:[%s2821_s5 + $0x3c0] sm:$0xff] %v1363_v9  ;;  %v1364_v12 = vmax.f32 %v1227_v10, 0.0  ;;  %v1229_v14 = vadd.f32 %v1228_v11, %v2215_v13 }
 0x2aa   :  { %v1230_v15 = vpop.f32.mrf.mxu1 }
 0x2ab   :  { %1492 = vst.msk [vmem:[%s2821_s5 + $0x3c8] sm:$0xff] %vm300_vm0, %v1364_v12  ;;  %v1365_v17 = vmax.f32 %v1229_v14, 0.0  ;;  %v1231_v18 = vadd.f32 %v1230_v15, %v2217_v16 }
 0x2ac   :  { %v1234_v19 = vpop.f32.mrf.mxu1 }
 0x2ad   :  { %1493 = vst [vmem:[%s2821_s5 + $0x3d0] sm:$0xff] %v1365_v17  ;;  %v1366_v20 = vmax.f32 %v1231_v18, 0.0  ;;  %v1235_v21 = vadd.f32 %v1234_v19, %v2215_v13 }
 0x2ae   :  { %v1236_v22 = vpop.f32.mrf.mxu1 }
 0x2af   :  { %1494 = vst.msk [vmem:[%s2821_s5 + $0x3d8] sm:$0xff] %vm300_vm0, %v1366_v20  ;;  %v1367_v23 = vmax.f32 %v1235_v21, 0.0  ;;  %v1237_v24 = vadd.f32 %v1236_v22, %v2217_v16 }
 0x2b0   :  { %v1238_v25 = vpop.f32.mrf.mxu1 }
 0x2b1   :  { %1495 = vst [vmem:[%s2821_s5 + $0x3e0] sm:$0xff] %v1367_v23  ;;  %v1368_v26 = vmax.f32 %v1237_v24, 0.0  ;;  %v1239_v27 = vadd.f32 %v1238_v25, %v2215_v13 }
 0x2b2   :  { %v1240_v28 = vpop.f32.mrf.mxu1 }
 0x2b3   :  { %1496 = vst.msk [vmem:[%s2821_s5 + $0x3e8] sm:$0xff] %vm300_vm0, %v1368_v26  ;;  %v1369_v29 = vmax.f32 %v1239_v27, 0.0  ;;  %v1241_v30 = vadd.f32 %v1240_v28, %v2217_v16 }
 0x2b5   :  { %1497 = vst [vmem:[%s2821_s5 + $0x3f0] sm:$0xff] %v1369_v29  ;;  %v1370_v31 = vmax.f32 %v1241_v30, 0.0 }
 0x2b7   :  { %1498 = vst.msk [vmem:[%s2821_s5 + $0x3f8] sm:$0xff] %vm300_vm0, %v1370_v31 }

</bundles_post_ra>
